<compile_context>
chip_gen: v7x
topology: tpu7x:2x2x1
jax: 0.10.0
libtpu: 0.0.40
codegen_flags: <defaults>
</compile_context>

<pallas_src>
import functools

import jax
import jax.numpy as jnp
from jax.experimental import pallas as pl
from jax.experimental.pallas import tpu as pltpu

VMEM_SPEC = pl.BlockSpec(memory_space=pltpu.MemorySpace.VMEM)

# ----------------------------- model constants ----------------------------- #
VOCAB = 128
HIDDEN = 32
N_HEADS = 2
D_HEAD = HIDDEN // N_HEADS
FFN = 64
MAX_SEQ = 8
MASK_TOKEN_ID = 5
LN_EPS = 1e-7

PARAM_ORDER = (
    "word_emb", "pos_emb", "ln_emb_g", "ln_emb_b",
    "wq", "bq", "wk", "bk", "wv", "bv", "wo", "bo",
    "ln_attn_g", "ln_attn_b",
    "w_ffn1", "b_ffn1", "w_ffn2", "b_ffn2", "ln_ffn_g", "ln_ffn_b",
    "mlm_dense_w", "mlm_dense_b", "mlm_ln_g", "mlm_ln_b", "mlm_decoder_b",
)


# ------------------------------ fused kernel ------------------------------- #

def _layer_norm(x, g, b):
    mu = jnp.mean(x, axis=-1, keepdims=True)
    var = jnp.mean(jnp.square(x - mu), axis=-1, keepdims=True)
    return (x - mu) * jax.lax.rsqrt(var + LN_EPS) * g + b


def _fused_forward_kernel(
    masked_ids_ref, input_ids_ref, attn_mask_ref,
    word_emb_ref, pos_emb_ref, ln_emb_g_ref, ln_emb_b_ref,
    wq_ref, bq_ref, wk_ref, bk_ref, wv_ref, bv_ref, wo_ref, bo_ref,
    ln_attn_g_ref, ln_attn_b_ref,
    w_ffn1_ref, b_ffn1_ref, w_ffn2_ref, b_ffn2_ref, ln_ffn_g_ref, ln_ffn_b_ref,
    mlm_dense_w_ref, mlm_dense_b_ref, mlm_ln_g_ref, mlm_ln_b_ref,
    mlm_decoder_b_ref,
    loss_ref, *, batch, seq):
    f32 = jnp.float32
    n_tok = batch * seq
    vocab, hidden = word_emb_ref.shape
    n_heads, _, d_head = wq_ref.shape
    scale = float(d_head) ** -0.5                      # python float, no capture

    masked_ids = masked_ids_ref[...]                   # [N, 1] int32
    word_emb = word_emb_ref[...]                       # [V, H]

    # --- embeddings: one-hot gather on the MXU, + positions, + LayerNorm ---
    vocab_iota = jax.lax.broadcasted_iota(jnp.int32, (n_tok, vocab), 1)
    tok_onehot = (vocab_iota == masked_ids).astype(f32)          # [N, V]
    emb = jnp.dot(tok_onehot, word_emb, preferred_element_type=f32)  # [N, H]
    pos = pos_emb_ref[...]                                       # [S, H]
    emb = emb + jnp.concatenate([pos] * batch, axis=0)           # tile over batch
    h = _layer_norm(emb, ln_emb_g_ref[...], ln_emb_b_ref[...])

    # --- multi-head self-attention (static loop over (batch, head)) ---
    mask_bias = (1.0 - attn_mask_ref[...].astype(f32)) * -1e9    # [B, S]
    per_batch = []
    for b in range(batch):
        h_b = h[b * seq:(b + 1) * seq, :]                        # [S, H]
        bias_b = mask_bias[b:b + 1, :]                           # [1, S]
        attn_b = jnp.zeros((seq, hidden), f32)
        for hd in range(n_heads):
            q = jnp.dot(h_b, wq_ref[hd], preferred_element_type=f32) + bq_ref[hd]
            k = jnp.dot(h_b, wk_ref[hd], preferred_element_type=f32) + bk_ref[hd]
            v = jnp.dot(h_b, wv_ref[hd], preferred_element_type=f32) + bv_ref[hd]
            s = jax.lax.dot_general(q, k, (((1,), (1,)), ((), ())),
                                    preferred_element_type=f32) * scale + bias_b
            m = jnp.max(s, axis=-1, keepdims=True)
            p = jnp.exp(s - m)
            p = p * pl.reciprocal(jnp.sum(p, axis=-1, keepdims=True), approx=True)
            ctx = jnp.dot(p, v, preferred_element_type=f32)      # [S, dH]
            # O-projection accumulated per head (== concat(heads) @ Wo).
            attn_b = attn_b + jnp.dot(ctx, wo_ref[hd], preferred_element_type=f32)
        per_batch.append(attn_b)
    attn_out = jnp.concatenate(per_batch, axis=0) + bo_ref[...]  # [N, H]
    h = _layer_norm(h + attn_out, ln_attn_g_ref[...], ln_attn_b_ref[...])

    # --- feed-forward ---
    # TODO(synk): PyTorch DeBERTa uses exact erf-GELU; tanh approximation used here.
    ff = jnp.dot(h, w_ffn1_ref[...], preferred_element_type=f32) + b_ffn1_ref[...]
    ff = jax.nn.gelu(ff, approximate=True)
    ff = jnp.dot(ff, w_ffn2_ref[...], preferred_element_type=f32) + b_ffn2_ref[...]
    last_hidden = _layer_norm(h + ff, ln_ffn_g_ref[...], ln_ffn_b_ref[...])

    # --- MLM head: dense + gelu + LN + tied decoder (t @ word_emb^T, in-kernel) ---
    t = (jnp.dot(last_hidden, mlm_dense_w_ref[...], preferred_element_type=f32)
         + mlm_dense_b_ref[...])
    t = jax.nn.gelu(t, approximate=True)
    t = _layer_norm(t, mlm_ln_g_ref[...], mlm_ln_b_ref[...])
    logits = jax.lax.dot_general(t, word_emb, (((1,), (1,)), ((), ())),
                                 preferred_element_type=f32) + mlm_decoder_b_ref[...]

    # --- labels (ignore = -100 except masked positions) + masked cross-entropy ---
    labels = jnp.where(masked_ids != MASK_TOKEN_ID, -100, input_ids_ref[...])  # [N,1]
    m = jnp.max(logits, axis=-1, keepdims=True)
    lse = m + jnp.log(jnp.sum(jnp.exp(logits - m), axis=-1, keepdims=True))
    label_onehot = (vocab_iota == labels).astype(f32)
    label_logit = jnp.sum(logits * label_onehot, axis=-1, keepdims=True)
    valid = (labels != -100).astype(f32)
    nll = (lse - label_logit) * valid
    total = jnp.sum(nll, axis=0, keepdims=True)                   # (1, 1)
    count = jnp.sum(valid, axis=0, keepdims=True)                 # (1, 1)
    # torch CrossEntropyLoss would be NaN when every label is ignored; guarded.
    loss_ref[...] = total / jnp.maximum(count, 1.0)


# --------------------------- synthetic BaseLM ------------------------------ #

def init_params(key):
    # TODO(synk): pretrained DeBERTa weights (AutoModel.from_pretrained) are not
    # reproducible here; the encoder is a deterministic synthetic stand-in.
    def nrm(k, shape, scale=0.02):
        return (scale * jax.random.normal(k, shape)).astype(jnp.float32)

    zeros = lambda shape: jnp.zeros(shape, jnp.float32)
    ones = lambda shape: jnp.ones(shape, jnp.float32)
    ks = jax.random.split(key, 10)
    return {
        "word_emb": nrm(ks[0], (VOCAB, HIDDEN)),
        "pos_emb": nrm(ks[1], (MAX_SEQ, HIDDEN)),
        "ln_emb_g": ones((1, HIDDEN)), "ln_emb_b": zeros((1, HIDDEN)),
        # Attention weights stored per-head so the kernel never lane-slices.
        "wq": nrm(ks[2], (N_HEADS, HIDDEN, D_HEAD)), "bq": zeros((N_HEADS, 1, D_HEAD)),
        "wk": nrm(ks[3], (N_HEADS, HIDDEN, D_HEAD)), "bk": zeros((N_HEADS, 1, D_HEAD)),
        "wv": nrm(ks[4], (N_HEADS, HIDDEN, D_HEAD)), "bv": zeros((N_HEADS, 1, D_HEAD)),
        "wo": nrm(ks[5], (N_HEADS, D_HEAD, HIDDEN)), "bo": zeros((1, HIDDEN)),
        "ln_attn_g": ones((1, HIDDEN)), "ln_attn_b": zeros((1, HIDDEN)),
        "w_ffn1": nrm(ks[6], (HIDDEN, FFN)), "b_ffn1": zeros((1, FFN)),
        "w_ffn2": nrm(ks[7], (FFN, HIDDEN)), "b_ffn2": zeros((1, HIDDEN)),
        "ln_ffn_g": ones((1, HIDDEN)), "ln_ffn_b": zeros((1, HIDDEN)),
        # DebertaOnlyMLMHead: dense + gelu + layernorm + tied decoder + bias
        "mlm_dense_w": nrm(ks[8], (HIDDEN, HIDDEN)), "mlm_dense_b": zeros((1, HIDDEN)),
        "mlm_ln_g": ones((1, HIDDEN)), "mlm_ln_b": zeros((1, HIDDEN)),
        "mlm_decoder_b": zeros((1, VOCAB)),
    }


def base_lm_forward(params, input_ids, masked_input_ids, attention_mask):
    """Mirrors BaseLM.forward: encoder on masked ids -> MLM head -> masked CE."""
    b, s = masked_input_ids.shape
    n = b * s
    kernel = functools.partial(_fused_forward_kernel, batch=b, seq=s)
    loss = pl.pallas_call(
        kernel,
        in_specs=[VMEM_SPEC] * (3 + len(PARAM_ORDER)),
        out_specs=VMEM_SPEC,
        out_shape=jax.ShapeDtypeStruct((1, 1), jnp.float32),
    )(
        masked_input_ids.reshape(n, 1).astype(jnp.int32),
        input_ids.reshape(n, 1).astype(jnp.int32),
        attention_mask.astype(jnp.int32),
        *[params[k] for k in PARAM_ORDER],
    )
    return loss[0, 0]


# --------------------------------- main ------------------------------------ #

if __name__ == "__main__":
    B, S = 2, MAX_SEQ
    root = jax.random.PRNGKey(0)
    k_param, k_ids, k_mask = jax.random.split(root, 3)

    params = init_params(k_param)

    input_ids = jax.random.randint(k_ids, (B, S), 0, VOCAB, dtype=jnp.int32)
    # randomly mask ~15% of tokens; guarantee at least one masked position
    mask_positions = jax.random.uniform(k_mask, (B, S)) < 0.15
    mask_positions = mask_positions.at[0, 0].set(True)
    masked_input_ids = jnp.where(mask_positions, jnp.int32(MASK_TOKEN_ID), input_ids)
    attention_mask = jnp.ones((B, S), dtype=jnp.int32)

    loss = jax.jit(base_lm_forward)(params, input_ids, masked_input_ids, attention_mask)
    loss = jax.block_until_ready(loss)
    assert jnp.isfinite(loss), f"non-finite loss: {loss}"
    print("KERNEL_OK")
</pallas_src>

<mosaic_0001>
module attributes {stable_mosaic.version = 11 : i64} {
  func.func @_fused_forward_kernel(%arg0: memref<16x1xi32, #tpu.memory_space<vmem>>, %arg1: memref<16x1xi32, #tpu.memory_space<vmem>>, %arg2: memref<2x8xi32, #tpu.memory_space<vmem>>, %arg3: memref<128x32xf32, #tpu.memory_space<vmem>>, %arg4: memref<8x32xf32, #tpu.memory_space<vmem>>, %arg5: memref<1x32xf32, #tpu.memory_space<vmem>>, %arg6: memref<1x32xf32, #tpu.memory_space<vmem>>, %arg7: memref<2x32x16xf32, #tpu.memory_space<vmem>>, %arg8: memref<2x1x16xf32, #tpu.memory_space<vmem>>, %arg9: memref<2x32x16xf32, #tpu.memory_space<vmem>>, %arg10: memref<2x1x16xf32, #tpu.memory_space<vmem>>, %arg11: memref<2x32x16xf32, #tpu.memory_space<vmem>>, %arg12: memref<2x1x16xf32, #tpu.memory_space<vmem>>, %arg13: memref<2x16x32xf32, #tpu.memory_space<vmem>>, %arg14: memref<1x32xf32, #tpu.memory_space<vmem>>, %arg15: memref<1x32xf32, #tpu.memory_space<vmem>>, %arg16: memref<1x32xf32, #tpu.memory_space<vmem>>, %arg17: memref<32x64xf32, #tpu.memory_space<vmem>>, %arg18: memref<1x64xf32, #tpu.memory_space<vmem>>, %arg19: memref<64x32xf32, #tpu.memory_space<vmem>>, %arg20: memref<1x32xf32, #tpu.memory_space<vmem>>, %arg21: memref<1x32xf32, #tpu.memory_space<vmem>>, %arg22: memref<1x32xf32, #tpu.memory_space<vmem>>, %arg23: memref<32x32xf32, #tpu.memory_space<vmem>>, %arg24: memref<1x32xf32, #tpu.memory_space<vmem>>, %arg25: memref<1x32xf32, #tpu.memory_space<vmem>>, %arg26: memref<1x32xf32, #tpu.memory_space<vmem>>, %arg27: memref<1x128xf32, #tpu.memory_space<vmem>>, %arg28: memref<1x1xf32, #tpu.memory_space<vmem>>) attributes {dimension_semantics = [], scalar_prefetch = 0 : i64, scratch_operands = 0 : i64, tpu.core_type = #tpu.core_type<tc>} {
    %c0 = arith.constant 0 : index
    %c0_0 = arith.constant 0 : index
    %0 = vector.load %arg0[%c0, %c0_0] : memref<16x1xi32, #tpu.memory_space<vmem>>, vector<16x1xi32>
    %c0_1 = arith.constant 0 : index
    %c0_2 = arith.constant 0 : index
    %1 = vector.load %arg3[%c0_1, %c0_2] : memref<128x32xf32, #tpu.memory_space<vmem>>, vector<128x32xf32>
    %2 = tpu.iota {dimensions = array<i32: 1>} : vector<16x128xi32>
    %3 = vector.broadcast %0 : vector<16x1xi32> to vector<16x128xi32>
    %4 = arith.cmpi eq, %2, %3 : vector<16x128xi32>
    %5 = arith.extui %4 : vector<16x128xi1> to vector<16x128xi32>
    %6 = arith.sitofp %5 : vector<16x128xi32> to vector<16x128xf32>
    %cst = arith.constant dense<0.000000e+00> : vector<16x32xf32>
    %7 = tpu.matmul %6, %1, %cst {dimension_numbers = #tpu.dot_dimension_numbers<[1], [0], [0], [1], [0, 0, 1, 1], [], []>} : vector<16x128xf32>, vector<128x32xf32>, vector<16x32xf32> -> vector<16x32xf32>
    %c0_3 = arith.constant 0 : index
    %c0_4 = arith.constant 0 : index
    %8 = vector.load %arg4[%c0_3, %c0_4] : memref<8x32xf32, #tpu.memory_space<vmem>>, vector<8x32xf32>
    %9 = tpu.concatenate %8, %8 in 0 : vector<8x32xf32>, vector<8x32xf32> -> vector<16x32xf32>
    %10 = arith.addf %7, %9 : vector<16x32xf32>
    %c0_5 = arith.constant 0 : index
    %c0_6 = arith.constant 0 : index
    %11 = vector.load %arg5[%c0_5, %c0_6] : memref<1x32xf32, #tpu.memory_space<vmem>>, vector<1x32xf32>
    %c0_7 = arith.constant 0 : index
    %c0_8 = arith.constant 0 : index
    %12 = vector.load %arg6[%c0_7, %c0_8] : memref<1x32xf32, #tpu.memory_space<vmem>>, vector<1x32xf32>
    %cst_9 = arith.constant dense<0.000000e+00> : vector<16xf32>
    %13 = vector.multi_reduction <add>, %10, %cst_9 [1] : vector<16x32xf32> to vector<16xf32>
    %14 = vector.shape_cast %13 : vector<16xf32> to vector<16x1xf32>
    %cst_10 = arith.constant 3.200000e+01 : f32
    %15 = vector.broadcast %cst_10 : f32 to vector<16x1xf32>
    %16 = arith.divf %14, %15 : vector<16x1xf32>
    %17 = vector.broadcast %16 : vector<16x1xf32> to vector<16x32xf32>
    %18 = arith.subf %10, %17 : vector<16x32xf32>
    %19 = arith.mulf %18, %18 : vector<16x32xf32>
    %cst_11 = arith.constant dense<0.000000e+00> : vector<16xf32>
    %20 = vector.multi_reduction <add>, %19, %cst_11 [1] : vector<16x32xf32> to vector<16xf32>
    %21 = vector.shape_cast %20 : vector<16xf32> to vector<16x1xf32>
    %cst_12 = arith.constant 3.200000e+01 : f32
    %22 = vector.broadcast %cst_12 : f32 to vector<16x1xf32>
    %23 = arith.divf %21, %22 : vector<16x1xf32>
    %24 = vector.broadcast %16 : vector<16x1xf32> to vector<16x32xf32>
    %25 = arith.subf %10, %24 : vector<16x32xf32>
    %cst_13 = arith.constant 1.000000e-07 : f32
    %26 = vector.broadcast %cst_13 : f32 to vector<16x1xf32>
    %27 = arith.addf %23, %26 : vector<16x1xf32>
    %28 = math.rsqrt %27 : vector<16x1xf32>
    %29 = vector.broadcast %28 : vector<16x1xf32> to vector<16x32xf32>
    %30 = arith.mulf %25, %29 : vector<16x32xf32>
    %31 = vector.broadcast %11 : vector<1x32xf32> to vector<16x32xf32>
    %32 = arith.mulf %30, %31 : vector<16x32xf32>
    %33 = vector.broadcast %12 : vector<1x32xf32> to vector<16x32xf32>
    %34 = arith.addf %32, %33 : vector<16x32xf32>
    %c0_14 = arith.constant 0 : index
    %c0_15 = arith.constant 0 : index
    %35 = vector.load %arg2[%c0_14, %c0_15] : memref<2x8xi32, #tpu.memory_space<vmem>>, vector<2x8xi32>
    %36 = arith.sitofp %35 : vector<2x8xi32> to vector<2x8xf32>
    %cst_16 = arith.constant 1.000000e+00 : f32
    %37 = vector.broadcast %cst_16 : f32 to vector<2x8xf32>
    %38 = arith.subf %37, %36 : vector<2x8xf32>
    %cst_17 = arith.constant -1.000000e+09 : f32
    %39 = vector.broadcast %cst_17 : f32 to vector<2x8xf32>
    %40 = arith.mulf %38, %39 : vector<2x8xf32>
    %41 = vector.extract_strided_slice %34 {offsets = [0, 0], sizes = [8, 32], strides = [1, 1]} : vector<16x32xf32> to vector<8x32xf32>
    %42 = vector.extract_strided_slice %40 {offsets = [0, 0], sizes = [1, 8], strides = [1, 1]} : vector<2x8xf32> to vector<1x8xf32>
    %cst_18 = arith.constant 0.000000e+00 : f32
    %43 = vector.broadcast %cst_18 : f32 to vector<8x32xf32>
    %c0_19 = arith.constant 0 : index
    %c0_20 = arith.constant 0 : index
    %c0_21 = arith.constant 0 : index
    %44 = vector.load %arg7[%c0_19, %c0_20, %c0_21] : memref<2x32x16xf32, #tpu.memory_space<vmem>>, vector<1x32x16xf32>
    %45 = vector.shape_cast %44 : vector<1x32x16xf32> to vector<32x16xf32>
    %cst_22 = arith.constant dense<0.000000e+00> : vector<8x16xf32>
    %46 = tpu.matmul %41, %45, %cst_22 {dimension_numbers = #tpu.dot_dimension_numbers<[1], [0], [0], [1], [0, 0, 1, 1], [], []>} : vector<8x32xf32>, vector<32x16xf32>, vector<8x16xf32> -> vector<8x16xf32>
    %c0_23 = arith.constant 0 : index
    %c0_24 = arith.constant 0 : index
    %c0_25 = arith.constant 0 : index
    %47 = vector.load %arg8[%c0_23, %c0_24, %c0_25] : memref<2x1x16xf32, #tpu.memory_space<vmem>>, vector<1x1x16xf32>
    %48 = vector.shape_cast %47 : vector<1x1x16xf32> to vector<1x16xf32>
    %49 = vector.broadcast %48 : vector<1x16xf32> to vector<8x16xf32>
    %50 = arith.addf %46, %49 : vector<8x16xf32>
    %c0_26 = arith.constant 0 : index
    %c0_27 = arith.constant 0 : index
    %c0_28 = arith.constant 0 : index
    %51 = vector.load %arg9[%c0_26, %c0_27, %c0_28] : memref<2x32x16xf32, #tpu.memory_space<vmem>>, vector<1x32x16xf32>
    %52 = vector.shape_cast %51 : vector<1x32x16xf32> to vector<32x16xf32>
    %cst_29 = arith.constant dense<0.000000e+00> : vector<8x16xf32>
    %53 = tpu.matmul %41, %52, %cst_29 {dimension_numbers = #tpu.dot_dimension_numbers<[1], [0], [0], [1], [0, 0, 1, 1], [], []>} : vector<8x32xf32>, vector<32x16xf32>, vector<8x16xf32> -> vector<8x16xf32>
    %c0_30 = arith.constant 0 : index
    %c0_31 = arith.constant 0 : index
    %c0_32 = arith.constant 0 : index
    %54 = vector.load %arg10[%c0_30, %c0_31, %c0_32] : memref<2x1x16xf32, #tpu.memory_space<vmem>>, vector<1x1x16xf32>
    %55 = vector.shape_cast %54 : vector<1x1x16xf32> to vector<1x16xf32>
    %56 = vector.broadcast %55 : vector<1x16xf32> to vector<8x16xf32>
    %57 = arith.addf %53, %56 : vector<8x16xf32>
    %c0_33 = arith.constant 0 : index
    %c0_34 = arith.constant 0 : index
    %c0_35 = arith.constant 0 : index
    %58 = vector.load %arg11[%c0_33, %c0_34, %c0_35] : memref<2x32x16xf32, #tpu.memory_space<vmem>>, vector<1x32x16xf32>
    %59 = vector.shape_cast %58 : vector<1x32x16xf32> to vector<32x16xf32>
    %cst_36 = arith.constant dense<0.000000e+00> : vector<8x16xf32>
    %60 = tpu.matmul %41, %59, %cst_36 {dimension_numbers = #tpu.dot_dimension_numbers<[1], [0], [0], [1], [0, 0, 1, 1], [], []>} : vector<8x32xf32>, vector<32x16xf32>, vector<8x16xf32> -> vector<8x16xf32>
    %c0_37 = arith.constant 0 : index
    %c0_38 = arith.constant 0 : index
    %c0_39 = arith.constant 0 : index
    %61 = vector.load %arg12[%c0_37, %c0_38, %c0_39] : memref<2x1x16xf32, #tpu.memory_space<vmem>>, vector<1x1x16xf32>
    %62 = vector.shape_cast %61 : vector<1x1x16xf32> to vector<1x16xf32>
    %63 = vector.broadcast %62 : vector<1x16xf32> to vector<8x16xf32>
    %64 = arith.addf %60, %63 : vector<8x16xf32>
    %cst_40 = arith.constant dense<0.000000e+00> : vector<8x8xf32>
    %65 = tpu.matmul %50, %57, %cst_40 {dimension_numbers = #tpu.dot_dimension_numbers<[1], [1], [0], [0], [0, 0, 1, 0], [], []>} : vector<8x16xf32>, vector<8x16xf32>, vector<8x8xf32> -> vector<8x8xf32>
    %cst_41 = arith.constant 2.500000e-01 : f32
    %66 = vector.broadcast %cst_41 : f32 to vector<8x8xf32>
    %67 = arith.mulf %65, %66 : vector<8x8xf32>
    %68 = vector.broadcast %42 : vector<1x8xf32> to vector<8x8xf32>
    %69 = arith.addf %67, %68 : vector<8x8xf32>
    %cst_42 = arith.constant dense<0xFF800000> : vector<8xf32>
    %70 = vector.multi_reduction <maximumf>, %69, %cst_42 [1] : vector<8x8xf32> to vector<8xf32>
    %71 = vector.shape_cast %70 : vector<8xf32> to vector<8x1xf32>
    %72 = vector.broadcast %71 : vector<8x1xf32> to vector<8x8xf32>
    %73 = arith.subf %69, %72 : vector<8x8xf32>
    %74 = math.exp %73 : vector<8x8xf32>
    %cst_43 = arith.constant dense<0.000000e+00> : vector<8xf32>
    %75 = vector.multi_reduction <add>, %74, %cst_43 [1] : vector<8x8xf32> to vector<8xf32>
    %76 = vector.shape_cast %75 : vector<8xf32> to vector<8x1xf32>
    %77 = tpu.reciprocal %76 {approx = true} : vector<8x1xf32> -> vector<8x1xf32>
    %78 = vector.broadcast %77 : vector<8x1xf32> to vector<8x8xf32>
    %79 = arith.mulf %74, %78 : vector<8x8xf32>
    %cst_44 = arith.constant dense<0.000000e+00> : vector<8x16xf32>
    %80 = tpu.matmul %79, %64, %cst_44 {dimension_numbers = #tpu.dot_dimension_numbers<[1], [0], [0], [1], [0, 0, 1, 1], [], []>} : vector<8x8xf32>, vector<8x16xf32>, vector<8x16xf32> -> vector<8x16xf32>
    %c0_45 = arith.constant 0 : index
    %c0_46 = arith.constant 0 : index
    %c0_47 = arith.constant 0 : index
    %81 = vector.load %arg13[%c0_45, %c0_46, %c0_47] : memref<2x16x32xf32, #tpu.memory_space<vmem>>, vector<1x16x32xf32>
    %82 = vector.shape_cast %81 : vector<1x16x32xf32> to vector<16x32xf32>
    %cst_48 = arith.constant dense<0.000000e+00> : vector<8x32xf32>
    %83 = tpu.matmul %80, %82, %cst_48 {dimension_numbers = #tpu.dot_dimension_numbers<[1], [0], [0], [1], [0, 0, 1, 1], [], []>} : vector<8x16xf32>, vector<16x32xf32>, vector<8x32xf32> -> vector<8x32xf32>
    %84 = arith.addf %43, %83 : vector<8x32xf32>
    %c1 = arith.constant 1 : index
    %c0_49 = arith.constant 0 : index
    %c0_50 = arith.constant 0 : index
    %85 = vector.load %arg7[%c1, %c0_49, %c0_50] : memref<2x32x16xf32, #tpu.memory_space<vmem>>, vector<1x32x16xf32>
    %86 = vector.shape_cast %85 : vector<1x32x16xf32> to vector<32x16xf32>
    %cst_51 = arith.constant dense<0.000000e+00> : vector<8x16xf32>
    %87 = tpu.matmul %41, %86, %cst_51 {dimension_numbers = #tpu.dot_dimension_numbers<[1], [0], [0], [1], [0, 0, 1, 1], [], []>} : vector<8x32xf32>, vector<32x16xf32>, vector<8x16xf32> -> vector<8x16xf32>
    %c1_52 = arith.constant 1 : index
    %c0_53 = arith.constant 0 : index
    %c0_54 = arith.constant 0 : index
    %88 = vector.load %arg8[%c1_52, %c0_53, %c0_54] : memref<2x1x16xf32, #tpu.memory_space<vmem>>, vector<1x1x16xf32>
    %89 = vector.shape_cast %88 : vector<1x1x16xf32> to vector<1x16xf32>
    %90 = vector.broadcast %89 : vector<1x16xf32> to vector<8x16xf32>
    %91 = arith.addf %87, %90 : vector<8x16xf32>
    %c1_55 = arith.constant 1 : index
    %c0_56 = arith.constant 0 : index
    %c0_57 = arith.constant 0 : index
    %92 = vector.load %arg9[%c1_55, %c0_56, %c0_57] : memref<2x32x16xf32, #tpu.memory_space<vmem>>, vector<1x32x16xf32>
    %93 = vector.shape_cast %92 : vector<1x32x16xf32> to vector<32x16xf32>
    %cst_58 = arith.constant dense<0.000000e+00> : vector<8x16xf32>
    %94 = tpu.matmul %41, %93, %cst_58 {dimension_numbers = #tpu.dot_dimension_numbers<[1], [0], [0], [1], [0, 0, 1, 1], [], []>} : vector<8x32xf32>, vector<32x16xf32>, vector<8x16xf32> -> vector<8x16xf32>
    %c1_59 = arith.constant 1 : index
    %c0_60 = arith.constant 0 : index
    %c0_61 = arith.constant 0 : index
    %95 = vector.load %arg10[%c1_59, %c0_60, %c0_61] : memref<2x1x16xf32, #tpu.memory_space<vmem>>, vector<1x1x16xf32>
    %96 = vector.shape_cast %95 : vector<1x1x16xf32> to vector<1x16xf32>
    %97 = vector.broadcast %96 : vector<1x16xf32> to vector<8x16xf32>
    %98 = arith.addf %94, %97 : vector<8x16xf32>
    %c1_62 = arith.constant 1 : index
    %c0_63 = arith.constant 0 : index
    %c0_64 = arith.constant 0 : index
    %99 = vector.load %arg11[%c1_62, %c0_63, %c0_64] : memref<2x32x16xf32, #tpu.memory_space<vmem>>, vector<1x32x16xf32>
    %100 = vector.shape_cast %99 : vector<1x32x16xf32> to vector<32x16xf32>
    %cst_65 = arith.constant dense<0.000000e+00> : vector<8x16xf32>
    %101 = tpu.matmul %41, %100, %cst_65 {dimension_numbers = #tpu.dot_dimension_numbers<[1], [0], [0], [1], [0, 0, 1, 1], [], []>} : vector<8x32xf32>, vector<32x16xf32>, vector<8x16xf32> -> vector<8x16xf32>
    %c1_66 = arith.constant 1 : index
    %c0_67 = arith.constant 0 : index
    %c0_68 = arith.constant 0 : index
    %102 = vector.load %arg12[%c1_66, %c0_67, %c0_68] : memref<2x1x16xf32, #tpu.memory_space<vmem>>, vector<1x1x16xf32>
    %103 = vector.shape_cast %102 : vector<1x1x16xf32> to vector<1x16xf32>
    %104 = vector.broadcast %103 : vector<1x16xf32> to vector<8x16xf32>
    %105 = arith.addf %101, %104 : vector<8x16xf32>
    %cst_69 = arith.constant dense<0.000000e+00> : vector<8x8xf32>
    %106 = tpu.matmul %91, %98, %cst_69 {dimension_numbers = #tpu.dot_dimension_numbers<[1], [1], [0], [0], [0, 0, 1, 0], [], []>} : vector<8x16xf32>, vector<8x16xf32>, vector<8x8xf32> -> vector<8x8xf32>
    %cst_70 = arith.constant 2.500000e-01 : f32
    %107 = vector.broadcast %cst_70 : f32 to vector<8x8xf32>
    %108 = arith.mulf %106, %107 : vector<8x8xf32>
    %109 = vector.broadcast %42 : vector<1x8xf32> to vector<8x8xf32>
    %110 = arith.addf %108, %109 : vector<8x8xf32>
    %cst_71 = arith.constant dense<0xFF800000> : vector<8xf32>
    %111 = vector.multi_reduction <maximumf>, %110, %cst_71 [1] : vector<8x8xf32> to vector<8xf32>
    %112 = vector.shape_cast %111 : vector<8xf32> to vector<8x1xf32>
    %113 = vector.broadcast %112 : vector<8x1xf32> to vector<8x8xf32>
    %114 = arith.subf %110, %113 : vector<8x8xf32>
    %115 = math.exp %114 : vector<8x8xf32>
    %cst_72 = arith.constant dense<0.000000e+00> : vector<8xf32>
    %116 = vector.multi_reduction <add>, %115, %cst_72 [1] : vector<8x8xf32> to vector<8xf32>
    %117 = vector.shape_cast %116 : vector<8xf32> to vector<8x1xf32>
    %118 = tpu.reciprocal %117 {approx = true} : vector<8x1xf32> -> vector<8x1xf32>
    %119 = vector.broadcast %118 : vector<8x1xf32> to vector<8x8xf32>
    %120 = arith.mulf %115, %119 : vector<8x8xf32>
    %cst_73 = arith.constant dense<0.000000e+00> : vector<8x16xf32>
    %121 = tpu.matmul %120, %105, %cst_73 {dimension_numbers = #tpu.dot_dimension_numbers<[1], [0], [0], [1], [0, 0, 1, 1], [], []>} : vector<8x8xf32>, vector<8x16xf32>, vector<8x16xf32> -> vector<8x16xf32>
    %c1_74 = arith.constant 1 : index
    %c0_75 = arith.constant 0 : index
    %c0_76 = arith.constant 0 : index
    %122 = vector.load %arg13[%c1_74, %c0_75, %c0_76] : memref<2x16x32xf32, #tpu.memory_space<vmem>>, vector<1x16x32xf32>
    %123 = vector.shape_cast %122 : vector<1x16x32xf32> to vector<16x32xf32>
    %cst_77 = arith.constant dense<0.000000e+00> : vector<8x32xf32>
    %124 = tpu.matmul %121, %123, %cst_77 {dimension_numbers = #tpu.dot_dimension_numbers<[1], [0], [0], [1], [0, 0, 1, 1], [], []>} : vector<8x16xf32>, vector<16x32xf32>, vector<8x32xf32> -> vector<8x32xf32>
    %125 = arith.addf %84, %124 : vector<8x32xf32>
    %126 = vector.extract_strided_slice %34 {offsets = [8, 0], sizes = [8, 32], strides = [1, 1]} : vector<16x32xf32> to vector<8x32xf32>
    %127 = vector.extract_strided_slice %40 {offsets = [1, 0], sizes = [1, 8], strides = [1, 1]} : vector<2x8xf32> to vector<1x8xf32>
    %cst_78 = arith.constant 0.000000e+00 : f32
    %128 = vector.broadcast %cst_78 : f32 to vector<8x32xf32>
    %c0_79 = arith.constant 0 : index
    %c0_80 = arith.constant 0 : index
    %c0_81 = arith.constant 0 : index
    %129 = vector.load %arg7[%c0_79, %c0_80, %c0_81] : memref<2x32x16xf32, #tpu.memory_space<vmem>>, vector<1x32x16xf32>
    %130 = vector.shape_cast %129 : vector<1x32x16xf32> to vector<32x16xf32>
    %cst_82 = arith.constant dense<0.000000e+00> : vector<8x16xf32>
    %131 = tpu.matmul %126, %130, %cst_82 {dimension_numbers = #tpu.dot_dimension_numbers<[1], [0], [0], [1], [0, 0, 1, 1], [], []>} : vector<8x32xf32>, vector<32x16xf32>, vector<8x16xf32> -> vector<8x16xf32>
    %c0_83 = arith.constant 0 : index
    %c0_84 = arith.constant 0 : index
    %c0_85 = arith.constant 0 : index
    %132 = vector.load %arg8[%c0_83, %c0_84, %c0_85] : memref<2x1x16xf32, #tpu.memory_space<vmem>>, vector<1x1x16xf32>
    %133 = vector.shape_cast %132 : vector<1x1x16xf32> to vector<1x16xf32>
    %134 = vector.broadcast %133 : vector<1x16xf32> to vector<8x16xf32>
    %135 = arith.addf %131, %134 : vector<8x16xf32>
    %c0_86 = arith.constant 0 : index
    %c0_87 = arith.constant 0 : index
    %c0_88 = arith.constant 0 : index
    %136 = vector.load %arg9[%c0_86, %c0_87, %c0_88] : memref<2x32x16xf32, #tpu.memory_space<vmem>>, vector<1x32x16xf32>
    %137 = vector.shape_cast %136 : vector<1x32x16xf32> to vector<32x16xf32>
    %cst_89 = arith.constant dense<0.000000e+00> : vector<8x16xf32>
    %138 = tpu.matmul %126, %137, %cst_89 {dimension_numbers = #tpu.dot_dimension_numbers<[1], [0], [0], [1], [0, 0, 1, 1], [], []>} : vector<8x32xf32>, vector<32x16xf32>, vector<8x16xf32> -> vector<8x16xf32>
    %c0_90 = arith.constant 0 : index
    %c0_91 = arith.constant 0 : index
    %c0_92 = arith.constant 0 : index
    %139 = vector.load %arg10[%c0_90, %c0_91, %c0_92] : memref<2x1x16xf32, #tpu.memory_space<vmem>>, vector<1x1x16xf32>
    %140 = vector.shape_cast %139 : vector<1x1x16xf32> to vector<1x16xf32>
    %141 = vector.broadcast %140 : vector<1x16xf32> to vector<8x16xf32>
    %142 = arith.addf %138, %141 : vector<8x16xf32>
    %c0_93 = arith.constant 0 : index
    %c0_94 = arith.constant 0 : index
    %c0_95 = arith.constant 0 : index
    %143 = vector.load %arg11[%c0_93, %c0_94, %c0_95] : memref<2x32x16xf32, #tpu.memory_space<vmem>>, vector<1x32x16xf32>
    %144 = vector.shape_cast %143 : vector<1x32x16xf32> to vector<32x16xf32>
    %cst_96 = arith.constant dense<0.000000e+00> : vector<8x16xf32>
    %145 = tpu.matmul %126, %144, %cst_96 {dimension_numbers = #tpu.dot_dimension_numbers<[1], [0], [0], [1], [0, 0, 1, 1], [], []>} : vector<8x32xf32>, vector<32x16xf32>, vector<8x16xf32> -> vector<8x16xf32>
    %c0_97 = arith.constant 0 : index
    %c0_98 = arith.constant 0 : index
    %c0_99 = arith.constant 0 : index
    %146 = vector.load %arg12[%c0_97, %c0_98, %c0_99] : memref<2x1x16xf32, #tpu.memory_space<vmem>>, vector<1x1x16xf32>
    %147 = vector.shape_cast %146 : vector<1x1x16xf32> to vector<1x16xf32>
    %148 = vector.broadcast %147 : vector<1x16xf32> to vector<8x16xf32>
    %149 = arith.addf %145, %148 : vector<8x16xf32>
    %cst_100 = arith.constant dense<0.000000e+00> : vector<8x8xf32>
    %150 = tpu.matmul %135, %142, %cst_100 {dimension_numbers = #tpu.dot_dimension_numbers<[1], [1], [0], [0], [0, 0, 1, 0], [], []>} : vector<8x16xf32>, vector<8x16xf32>, vector<8x8xf32> -> vector<8x8xf32>
    %cst_101 = arith.constant 2.500000e-01 : f32
    %151 = vector.broadcast %cst_101 : f32 to vector<8x8xf32>
    %152 = arith.mulf %150, %151 : vector<8x8xf32>
    %153 = vector.broadcast %127 : vector<1x8xf32> to vector<8x8xf32>
    %154 = arith.addf %152, %153 : vector<8x8xf32>
    %cst_102 = arith.constant dense<0xFF800000> : vector<8xf32>
    %155 = vector.multi_reduction <maximumf>, %154, %cst_102 [1] : vector<8x8xf32> to vector<8xf32>
    %156 = vector.shape_cast %155 : vector<8xf32> to vector<8x1xf32>
    %157 = vector.broadcast %156 : vector<8x1xf32> to vector<8x8xf32>
    %158 = arith.subf %154, %157 : vector<8x8xf32>
    %159 = math.exp %158 : vector<8x8xf32>
    %cst_103 = arith.constant dense<0.000000e+00> : vector<8xf32>
    %160 = vector.multi_reduction <add>, %159, %cst_103 [1] : vector<8x8xf32> to vector<8xf32>
    %161 = vector.shape_cast %160 : vector<8xf32> to vector<8x1xf32>
    %162 = tpu.reciprocal %161 {approx = true} : vector<8x1xf32> -> vector<8x1xf32>
    %163 = vector.broadcast %162 : vector<8x1xf32> to vector<8x8xf32>
    %164 = arith.mulf %159, %163 : vector<8x8xf32>
    %cst_104 = arith.constant dense<0.000000e+00> : vector<8x16xf32>
    %165 = tpu.matmul %164, %149, %cst_104 {dimension_numbers = #tpu.dot_dimension_numbers<[1], [0], [0], [1], [0, 0, 1, 1], [], []>} : vector<8x8xf32>, vector<8x16xf32>, vector<8x16xf32> -> vector<8x16xf32>
    %c0_105 = arith.constant 0 : index
    %c0_106 = arith.constant 0 : index
    %c0_107 = arith.constant 0 : index
    %166 = vector.load %arg13[%c0_105, %c0_106, %c0_107] : memref<2x16x32xf32, #tpu.memory_space<vmem>>, vector<1x16x32xf32>
    %167 = vector.shape_cast %166 : vector<1x16x32xf32> to vector<16x32xf32>
    %cst_108 = arith.constant dense<0.000000e+00> : vector<8x32xf32>
    %168 = tpu.matmul %165, %167, %cst_108 {dimension_numbers = #tpu.dot_dimension_numbers<[1], [0], [0], [1], [0, 0, 1, 1], [], []>} : vector<8x16xf32>, vector<16x32xf32>, vector<8x32xf32> -> vector<8x32xf32>
    %169 = arith.addf %128, %168 : vector<8x32xf32>
    %c1_109 = arith.constant 1 : index
    %c0_110 = arith.constant 0 : index
    %c0_111 = arith.constant 0 : index
    %170 = vector.load %arg7[%c1_109, %c0_110, %c0_111] : memref<2x32x16xf32, #tpu.memory_space<vmem>>, vector<1x32x16xf32>
    %171 = vector.shape_cast %170 : vector<1x32x16xf32> to vector<32x16xf32>
    %cst_112 = arith.constant dense<0.000000e+00> : vector<8x16xf32>
    %172 = tpu.matmul %126, %171, %cst_112 {dimension_numbers = #tpu.dot_dimension_numbers<[1], [0], [0], [1], [0, 0, 1, 1], [], []>} : vector<8x32xf32>, vector<32x16xf32>, vector<8x16xf32> -> vector<8x16xf32>
    %c1_113 = arith.constant 1 : index
    %c0_114 = arith.constant 0 : index
    %c0_115 = arith.constant 0 : index
    %173 = vector.load %arg8[%c1_113, %c0_114, %c0_115] : memref<2x1x16xf32, #tpu.memory_space<vmem>>, vector<1x1x16xf32>
    %174 = vector.shape_cast %173 : vector<1x1x16xf32> to vector<1x16xf32>
    %175 = vector.broadcast %174 : vector<1x16xf32> to vector<8x16xf32>
    %176 = arith.addf %172, %175 : vector<8x16xf32>
    %c1_116 = arith.constant 1 : index
    %c0_117 = arith.constant 0 : index
    %c0_118 = arith.constant 0 : index
    %177 = vector.load %arg9[%c1_116, %c0_117, %c0_118] : memref<2x32x16xf32, #tpu.memory_space<vmem>>, vector<1x32x16xf32>
    %178 = vector.shape_cast %177 : vector<1x32x16xf32> to vector<32x16xf32>
    %cst_119 = arith.constant dense<0.000000e+00> : vector<8x16xf32>
    %179 = tpu.matmul %126, %178, %cst_119 {dimension_numbers = #tpu.dot_dimension_numbers<[1], [0], [0], [1], [0, 0, 1, 1], [], []>} : vector<8x32xf32>, vector<32x16xf32>, vector<8x16xf32> -> vector<8x16xf32>
    %c1_120 = arith.constant 1 : index
    %c0_121 = arith.constant 0 : index
    %c0_122 = arith.constant 0 : index
    %180 = vector.load %arg10[%c1_120, %c0_121, %c0_122] : memref<2x1x16xf32, #tpu.memory_space<vmem>>, vector<1x1x16xf32>
    %181 = vector.shape_cast %180 : vector<1x1x16xf32> to vector<1x16xf32>
    %182 = vector.broadcast %181 : vector<1x16xf32> to vector<8x16xf32>
    %183 = arith.addf %179, %182 : vector<8x16xf32>
    %c1_123 = arith.constant 1 : index
    %c0_124 = arith.constant 0 : index
    %c0_125 = arith.constant 0 : index
    %184 = vector.load %arg11[%c1_123, %c0_124, %c0_125] : memref<2x32x16xf32, #tpu.memory_space<vmem>>, vector<1x32x16xf32>
    %185 = vector.shape_cast %184 : vector<1x32x16xf32> to vector<32x16xf32>
    %cst_126 = arith.constant dense<0.000000e+00> : vector<8x16xf32>
    %186 = tpu.matmul %126, %185, %cst_126 {dimension_numbers = #tpu.dot_dimension_numbers<[1], [0], [0], [1], [0, 0, 1, 1], [], []>} : vector<8x32xf32>, vector<32x16xf32>, vector<8x16xf32> -> vector<8x16xf32>
    %c1_127 = arith.constant 1 : index
    %c0_128 = arith.constant 0 : index
    %c0_129 = arith.constant 0 : index
    %187 = vector.load %arg12[%c1_127, %c0_128, %c0_129] : memref<2x1x16xf32, #tpu.memory_space<vmem>>, vector<1x1x16xf32>
    %188 = vector.shape_cast %187 : vector<1x1x16xf32> to vector<1x16xf32>
    %189 = vector.broadcast %188 : vector<1x16xf32> to vector<8x16xf32>
    %190 = arith.addf %186, %189 : vector<8x16xf32>
    %cst_130 = arith.constant dense<0.000000e+00> : vector<8x8xf32>
    %191 = tpu.matmul %176, %183, %cst_130 {dimension_numbers = #tpu.dot_dimension_numbers<[1], [1], [0], [0], [0, 0, 1, 0], [], []>} : vector<8x16xf32>, vector<8x16xf32>, vector<8x8xf32> -> vector<8x8xf32>
    %cst_131 = arith.constant 2.500000e-01 : f32
    %192 = vector.broadcast %cst_131 : f32 to vector<8x8xf32>
    %193 = arith.mulf %191, %192 : vector<8x8xf32>
    %194 = vector.broadcast %127 : vector<1x8xf32> to vector<8x8xf32>
    %195 = arith.addf %193, %194 : vector<8x8xf32>
    %cst_132 = arith.constant dense<0xFF800000> : vector<8xf32>
    %196 = vector.multi_reduction <maximumf>, %195, %cst_132 [1] : vector<8x8xf32> to vector<8xf32>
    %197 = vector.shape_cast %196 : vector<8xf32> to vector<8x1xf32>
    %198 = vector.broadcast %197 : vector<8x1xf32> to vector<8x8xf32>
    %199 = arith.subf %195, %198 : vector<8x8xf32>
    %200 = math.exp %199 : vector<8x8xf32>
    %cst_133 = arith.constant dense<0.000000e+00> : vector<8xf32>
    %201 = vector.multi_reduction <add>, %200, %cst_133 [1] : vector<8x8xf32> to vector<8xf32>
    %202 = vector.shape_cast %201 : vector<8xf32> to vector<8x1xf32>
    %203 = tpu.reciprocal %202 {approx = true} : vector<8x1xf32> -> vector<8x1xf32>
    %204 = vector.broadcast %203 : vector<8x1xf32> to vector<8x8xf32>
    %205 = arith.mulf %200, %204 : vector<8x8xf32>
    %cst_134 = arith.constant dense<0.000000e+00> : vector<8x16xf32>
    %206 = tpu.matmul %205, %190, %cst_134 {dimension_numbers = #tpu.dot_dimension_numbers<[1], [0], [0], [1], [0, 0, 1, 1], [], []>} : vector<8x8xf32>, vector<8x16xf32>, vector<8x16xf32> -> vector<8x16xf32>
    %c1_135 = arith.constant 1 : index
    %c0_136 = arith.constant 0 : index
    %c0_137 = arith.constant 0 : index
    %207 = vector.load %arg13[%c1_135, %c0_136, %c0_137] : memref<2x16x32xf32, #tpu.memory_space<vmem>>, vector<1x16x32xf32>
    %208 = vector.shape_cast %207 : vector<1x16x32xf32> to vector<16x32xf32>
    %cst_138 = arith.constant dense<0.000000e+00> : vector<8x32xf32>
    %209 = tpu.matmul %206, %208, %cst_138 {dimension_numbers = #tpu.dot_dimension_numbers<[1], [0], [0], [1], [0, 0, 1, 1], [], []>} : vector<8x16xf32>, vector<16x32xf32>, vector<8x32xf32> -> vector<8x32xf32>
    %210 = arith.addf %169, %209 : vector<8x32xf32>
    %211 = tpu.concatenate %125, %210 in 0 : vector<8x32xf32>, vector<8x32xf32> -> vector<16x32xf32>
    %c0_139 = arith.constant 0 : index
    %c0_140 = arith.constant 0 : index
    %212 = vector.load %arg14[%c0_139, %c0_140] : memref<1x32xf32, #tpu.memory_space<vmem>>, vector<1x32xf32>
    %213 = vector.broadcast %212 : vector<1x32xf32> to vector<16x32xf32>
    %214 = arith.addf %211, %213 : vector<16x32xf32>
    %215 = arith.addf %34, %214 : vector<16x32xf32>
    %c0_141 = arith.constant 0 : index
    %c0_142 = arith.constant 0 : index
    %216 = vector.load %arg15[%c0_141, %c0_142] : memref<1x32xf32, #tpu.memory_space<vmem>>, vector<1x32xf32>
    %c0_143 = arith.constant 0 : index
    %c0_144 = arith.constant 0 : index
    %217 = vector.load %arg16[%c0_143, %c0_144] : memref<1x32xf32, #tpu.memory_space<vmem>>, vector<1x32xf32>
    %cst_145 = arith.constant dense<0.000000e+00> : vector<16xf32>
    %218 = vector.multi_reduction <add>, %215, %cst_145 [1] : vector<16x32xf32> to vector<16xf32>
    %219 = vector.shape_cast %218 : vector<16xf32> to vector<16x1xf32>
    %cst_146 = arith.constant 3.200000e+01 : f32
    %220 = vector.broadcast %cst_146 : f32 to vector<16x1xf32>
    %221 = arith.divf %219, %220 : vector<16x1xf32>
    %222 = vector.broadcast %221 : vector<16x1xf32> to vector<16x32xf32>
    %223 = arith.subf %215, %222 : vector<16x32xf32>
    %224 = arith.mulf %223, %223 : vector<16x32xf32>
    %cst_147 = arith.constant dense<0.000000e+00> : vector<16xf32>
    %225 = vector.multi_reduction <add>, %224, %cst_147 [1] : vector<16x32xf32> to vector<16xf32>
    %226 = vector.shape_cast %225 : vector<16xf32> to vector<16x1xf32>
    %cst_148 = arith.constant 3.200000e+01 : f32
    %227 = vector.broadcast %cst_148 : f32 to vector<16x1xf32>
    %228 = arith.divf %226, %227 : vector<16x1xf32>
    %229 = vector.broadcast %221 : vector<16x1xf32> to vector<16x32xf32>
    %230 = arith.subf %215, %229 : vector<16x32xf32>
    %cst_149 = arith.constant 1.000000e-07 : f32
    %231 = vector.broadcast %cst_149 : f32 to vector<16x1xf32>
    %232 = arith.addf %228, %231 : vector<16x1xf32>
    %233 = math.rsqrt %232 : vector<16x1xf32>
    %234 = vector.broadcast %233 : vector<16x1xf32> to vector<16x32xf32>
    %235 = arith.mulf %230, %234 : vector<16x32xf32>
    %236 = vector.broadcast %216 : vector<1x32xf32> to vector<16x32xf32>
    %237 = arith.mulf %235, %236 : vector<16x32xf32>
    %238 = vector.broadcast %217 : vector<1x32xf32> to vector<16x32xf32>
    %239 = arith.addf %237, %238 : vector<16x32xf32>
    %c0_150 = arith.constant 0 : index
    %c0_151 = arith.constant 0 : index
    %240 = vector.load %arg17[%c0_150, %c0_151] : memref<32x64xf32, #tpu.memory_space<vmem>>, vector<32x64xf32>
    %cst_152 = arith.constant dense<0.000000e+00> : vector<16x64xf32>
    %241 = tpu.matmul %239, %240, %cst_152 {dimension_numbers = #tpu.dot_dimension_numbers<[1], [0], [0], [1], [0, 0, 1, 1], [], []>} : vector<16x32xf32>, vector<32x64xf32>, vector<16x64xf32> -> vector<16x64xf32>
    %c0_153 = arith.constant 0 : index
    %c0_154 = arith.constant 0 : index
    %242 = vector.load %arg18[%c0_153, %c0_154] : memref<1x64xf32, #tpu.memory_space<vmem>>, vector<1x64xf32>
    %243 = vector.broadcast %242 : vector<1x64xf32> to vector<16x64xf32>
    %244 = arith.addf %241, %243 : vector<16x64xf32>
    %245 = arith.mulf %244, %244 : vector<16x64xf32>
    %246 = arith.mulf %244, %245 : vector<16x64xf32>
    %cst_155 = arith.constant 4.471500e-02 : f32
    %247 = vector.broadcast %cst_155 : f32 to vector<16x64xf32>
    %248 = arith.mulf %247, %246 : vector<16x64xf32>
    %249 = arith.addf %244, %248 : vector<16x64xf32>
    %cst_156 = arith.constant 0.797884583 : f32
    %250 = vector.broadcast %cst_156 : f32 to vector<16x64xf32>
    %251 = arith.mulf %250, %249 : vector<16x64xf32>
    %252 = math.tanh %251 : vector<16x64xf32>
    %cst_157 = arith.constant 1.000000e+00 : f32
    %253 = vector.broadcast %cst_157 : f32 to vector<16x64xf32>
    %254 = arith.addf %253, %252 : vector<16x64xf32>
    %cst_158 = arith.constant 5.000000e-01 : f32
    %255 = vector.broadcast %cst_158 : f32 to vector<16x64xf32>
    %256 = arith.mulf %255, %254 : vector<16x64xf32>
    %257 = arith.mulf %244, %256 : vector<16x64xf32>
    %c0_159 = arith.constant 0 : index
    %c0_160 = arith.constant 0 : index
    %258 = vector.load %arg19[%c0_159, %c0_160] : memref<64x32xf32, #tpu.memory_space<vmem>>, vector<64x32xf32>
    %cst_161 = arith.constant dense<0.000000e+00> : vector<16x32xf32>
    %259 = tpu.matmul %257, %258, %cst_161 {dimension_numbers = #tpu.dot_dimension_numbers<[1], [0], [0], [1], [0, 0, 1, 1], [], []>} : vector<16x64xf32>, vector<64x32xf32>, vector<16x32xf32> -> vector<16x32xf32>
    %c0_162 = arith.constant 0 : index
    %c0_163 = arith.constant 0 : index
    %260 = vector.load %arg20[%c0_162, %c0_163] : memref<1x32xf32, #tpu.memory_space<vmem>>, vector<1x32xf32>
    %261 = vector.broadcast %260 : vector<1x32xf32> to vector<16x32xf32>
    %262 = arith.addf %259, %261 : vector<16x32xf32>
    %263 = arith.addf %239, %262 : vector<16x32xf32>
    %c0_164 = arith.constant 0 : index
    %c0_165 = arith.constant 0 : index
    %264 = vector.load %arg21[%c0_164, %c0_165] : memref<1x32xf32, #tpu.memory_space<vmem>>, vector<1x32xf32>
    %c0_166 = arith.constant 0 : index
    %c0_167 = arith.constant 0 : index
    %265 = vector.load %arg22[%c0_166, %c0_167] : memref<1x32xf32, #tpu.memory_space<vmem>>, vector<1x32xf32>
    %cst_168 = arith.constant dense<0.000000e+00> : vector<16xf32>
    %266 = vector.multi_reduction <add>, %263, %cst_168 [1] : vector<16x32xf32> to vector<16xf32>
    %267 = vector.shape_cast %266 : vector<16xf32> to vector<16x1xf32>
    %cst_169 = arith.constant 3.200000e+01 : f32
    %268 = vector.broadcast %cst_169 : f32 to vector<16x1xf32>
    %269 = arith.divf %267, %268 : vector<16x1xf32>
    %270 = vector.broadcast %269 : vector<16x1xf32> to vector<16x32xf32>
    %271 = arith.subf %263, %270 : vector<16x32xf32>
    %272 = arith.mulf %271, %271 : vector<16x32xf32>
    %cst_170 = arith.constant dense<0.000000e+00> : vector<16xf32>
    %273 = vector.multi_reduction <add>, %272, %cst_170 [1] : vector<16x32xf32> to vector<16xf32>
    %274 = vector.shape_cast %273 : vector<16xf32> to vector<16x1xf32>
    %cst_171 = arith.constant 3.200000e+01 : f32
    %275 = vector.broadcast %cst_171 : f32 to vector<16x1xf32>
    %276 = arith.divf %274, %275 : vector<16x1xf32>
    %277 = vector.broadcast %269 : vector<16x1xf32> to vector<16x32xf32>
    %278 = arith.subf %263, %277 : vector<16x32xf32>
    %cst_172 = arith.constant 1.000000e-07 : f32
    %279 = vector.broadcast %cst_172 : f32 to vector<16x1xf32>
    %280 = arith.addf %276, %279 : vector<16x1xf32>
    %281 = math.rsqrt %280 : vector<16x1xf32>
    %282 = vector.broadcast %281 : vector<16x1xf32> to vector<16x32xf32>
    %283 = arith.mulf %278, %282 : vector<16x32xf32>
    %284 = vector.broadcast %264 : vector<1x32xf32> to vector<16x32xf32>
    %285 = arith.mulf %283, %284 : vector<16x32xf32>
    %286 = vector.broadcast %265 : vector<1x32xf32> to vector<16x32xf32>
    %287 = arith.addf %285, %286 : vector<16x32xf32>
    %c0_173 = arith.constant 0 : index
    %c0_174 = arith.constant 0 : index
    %288 = vector.load %arg23[%c0_173, %c0_174] : memref<32x32xf32, #tpu.memory_space<vmem>>, vector<32x32xf32>
    %cst_175 = arith.constant dense<0.000000e+00> : vector<16x32xf32>
    %289 = tpu.matmul %287, %288, %cst_175 {dimension_numbers = #tpu.dot_dimension_numbers<[1], [0], [0], [1], [0, 0, 1, 1], [], []>} : vector<16x32xf32>, vector<32x32xf32>, vector<16x32xf32> -> vector<16x32xf32>
    %c0_176 = arith.constant 0 : index
    %c0_177 = arith.constant 0 : index
    %290 = vector.load %arg24[%c0_176, %c0_177] : memref<1x32xf32, #tpu.memory_space<vmem>>, vector<1x32xf32>
    %291 = vector.broadcast %290 : vector<1x32xf32> to vector<16x32xf32>
    %292 = arith.addf %289, %291 : vector<16x32xf32>
    %293 = arith.mulf %292, %292 : vector<16x32xf32>
    %294 = arith.mulf %292, %293 : vector<16x32xf32>
    %cst_178 = arith.constant 4.471500e-02 : f32
    %295 = vector.broadcast %cst_178 : f32 to vector<16x32xf32>
    %296 = arith.mulf %295, %294 : vector<16x32xf32>
    %297 = arith.addf %292, %296 : vector<16x32xf32>
    %cst_179 = arith.constant 0.797884583 : f32
    %298 = vector.broadcast %cst_179 : f32 to vector<16x32xf32>
    %299 = arith.mulf %298, %297 : vector<16x32xf32>
    %300 = math.tanh %299 : vector<16x32xf32>
    %cst_180 = arith.constant 1.000000e+00 : f32
    %301 = vector.broadcast %cst_180 : f32 to vector<16x32xf32>
    %302 = arith.addf %301, %300 : vector<16x32xf32>
    %cst_181 = arith.constant 5.000000e-01 : f32
    %303 = vector.broadcast %cst_181 : f32 to vector<16x32xf32>
    %304 = arith.mulf %303, %302 : vector<16x32xf32>
    %305 = arith.mulf %292, %304 : vector<16x32xf32>
    %c0_182 = arith.constant 0 : index
    %c0_183 = arith.constant 0 : index
    %306 = vector.load %arg25[%c0_182, %c0_183] : memref<1x32xf32, #tpu.memory_space<vmem>>, vector<1x32xf32>
    %c0_184 = arith.constant 0 : index
    %c0_185 = arith.constant 0 : index
    %307 = vector.load %arg26[%c0_184, %c0_185] : memref<1x32xf32, #tpu.memory_space<vmem>>, vector<1x32xf32>
    %cst_186 = arith.constant dense<0.000000e+00> : vector<16xf32>
    %308 = vector.multi_reduction <add>, %305, %cst_186 [1] : vector<16x32xf32> to vector<16xf32>
    %309 = vector.shape_cast %308 : vector<16xf32> to vector<16x1xf32>
    %cst_187 = arith.constant 3.200000e+01 : f32
    %310 = vector.broadcast %cst_187 : f32 to vector<16x1xf32>
    %311 = arith.divf %309, %310 : vector<16x1xf32>
    %312 = vector.broadcast %311 : vector<16x1xf32> to vector<16x32xf32>
    %313 = arith.subf %305, %312 : vector<16x32xf32>
    %314 = arith.mulf %313, %313 : vector<16x32xf32>
    %cst_188 = arith.constant dense<0.000000e+00> : vector<16xf32>
    %315 = vector.multi_reduction <add>, %314, %cst_188 [1] : vector<16x32xf32> to vector<16xf32>
    %316 = vector.shape_cast %315 : vector<16xf32> to vector<16x1xf32>
    %cst_189 = arith.constant 3.200000e+01 : f32
    %317 = vector.broadcast %cst_189 : f32 to vector<16x1xf32>
    %318 = arith.divf %316, %317 : vector<16x1xf32>
    %319 = vector.broadcast %311 : vector<16x1xf32> to vector<16x32xf32>
    %320 = arith.subf %305, %319 : vector<16x32xf32>
    %cst_190 = arith.constant 1.000000e-07 : f32
    %321 = vector.broadcast %cst_190 : f32 to vector<16x1xf32>
    %322 = arith.addf %318, %321 : vector<16x1xf32>
    %323 = math.rsqrt %322 : vector<16x1xf32>
    %324 = vector.broadcast %323 : vector<16x1xf32> to vector<16x32xf32>
    %325 = arith.mulf %320, %324 : vector<16x32xf32>
    %326 = vector.broadcast %306 : vector<1x32xf32> to vector<16x32xf32>
    %327 = arith.mulf %325, %326 : vector<16x32xf32>
    %328 = vector.broadcast %307 : vector<1x32xf32> to vector<16x32xf32>
    %329 = arith.addf %327, %328 : vector<16x32xf32>
    %cst_191 = arith.constant dense<0.000000e+00> : vector<16x128xf32>
    %330 = tpu.matmul %329, %1, %cst_191 {dimension_numbers = #tpu.dot_dimension_numbers<[1], [1], [0], [0], [0, 0, 1, 0], [], []>} : vector<16x32xf32>, vector<128x32xf32>, vector<16x128xf32> -> vector<16x128xf32>
    %c0_192 = arith.constant 0 : index
    %c0_193 = arith.constant 0 : index
    %331 = vector.load %arg27[%c0_192, %c0_193] : memref<1x128xf32, #tpu.memory_space<vmem>>, vector<1x128xf32>
    %332 = vector.broadcast %331 : vector<1x128xf32> to vector<16x128xf32>
    %333 = arith.addf %330, %332 : vector<16x128xf32>
    %c5_i32 = arith.constant 5 : i32
    %334 = vector.broadcast %c5_i32 : i32 to vector<16x1xi32>
    %335 = arith.cmpi ne, %0, %334 : vector<16x1xi32>
    %c0_194 = arith.constant 0 : index
    %c0_195 = arith.constant 0 : index
    %336 = vector.load %arg1[%c0_194, %c0_195] : memref<16x1xi32, #tpu.memory_space<vmem>>, vector<16x1xi32>
    %c-100_i32 = arith.constant -100 : i32
    %337 = vector.broadcast %c-100_i32 : i32 to vector<16x1xi32>
    %338 = arith.select %335, %337, %336 : vector<16x1xi1>, vector<16x1xi32>
    %cst_196 = arith.constant dense<0xFF800000> : vector<16xf32>
    %339 = vector.multi_reduction <maximumf>, %333, %cst_196 [1] : vector<16x128xf32> to vector<16xf32>
    %340 = vector.shape_cast %339 : vector<16xf32> to vector<16x1xf32>
    %341 = vector.broadcast %340 : vector<16x1xf32> to vector<16x128xf32>
    %342 = arith.subf %333, %341 : vector<16x128xf32>
    %343 = math.exp %342 : vector<16x128xf32>
    %cst_197 = arith.constant dense<0.000000e+00> : vector<16xf32>
    %344 = vector.multi_reduction <add>, %343, %cst_197 [1] : vector<16x128xf32> to vector<16xf32>
    %345 = vector.shape_cast %344 : vector<16xf32> to vector<16x1xf32>
    %346 = math.log %345 : vector<16x1xf32>
    %347 = arith.addf %340, %346 : vector<16x1xf32>
    %348 = vector.broadcast %338 : vector<16x1xi32> to vector<16x128xi32>
    %349 = arith.cmpi eq, %2, %348 : vector<16x128xi32>
    %350 = arith.extui %349 : vector<16x128xi1> to vector<16x128xi32>
    %351 = arith.sitofp %350 : vector<16x128xi32> to vector<16x128xf32>
    %352 = arith.mulf %333, %351 : vector<16x128xf32>
    %cst_198 = arith.constant dense<0.000000e+00> : vector<16xf32>
    %353 = vector.multi_reduction <add>, %352, %cst_198 [1] : vector<16x128xf32> to vector<16xf32>
    %354 = vector.shape_cast %353 : vector<16xf32> to vector<16x1xf32>
    %c-100_i32_199 = arith.constant -100 : i32
    %355 = vector.broadcast %c-100_i32_199 : i32 to vector<16x1xi32>
    %356 = arith.cmpi ne, %338, %355 : vector<16x1xi32>
    %357 = arith.extui %356 : vector<16x1xi1> to vector<16x1xi32>
    %358 = arith.sitofp %357 : vector<16x1xi32> to vector<16x1xf32>
    %359 = arith.subf %347, %354 : vector<16x1xf32>
    %360 = arith.mulf %359, %358 : vector<16x1xf32>
    %cst_200 = arith.constant dense<0.000000e+00> : vector<1xf32>
    %361 = vector.multi_reduction <add>, %360, %cst_200 [0] : vector<16x1xf32> to vector<1xf32>
    %362 = vector.shape_cast %361 : vector<1xf32> to vector<1x1xf32>
    %cst_201 = arith.constant dense<0.000000e+00> : vector<1xf32>
    %363 = vector.multi_reduction <add>, %358, %cst_201 [0] : vector<16x1xf32> to vector<1xf32>
    %364 = vector.shape_cast %363 : vector<1xf32> to vector<1x1xf32>
    %cst_202 = arith.constant 1.000000e+00 : f32
    %365 = vector.broadcast %cst_202 : f32 to vector<1x1xf32>
    %366 = arith.maximumf %364, %365 : vector<1x1xf32>
    %367 = arith.divf %362, %366 : vector<1x1xf32>
    %c0_203 = arith.constant 0 : index
    %c0_204 = arith.constant 0 : index
    %368 = vector.load %arg28[%c0_203, %c0_204] : memref<1x1xf32, #tpu.memory_space<vmem>>, vector<1x1xf32>
    tpu.vector_store %arg28[%c0_203, %c0_204], %367 {strides = array<i32>} : memref<1x1xf32, #tpu.memory_space<vmem>>, vector<1x1xf32>,
    return
  }
}

</mosaic_0001>

<bundles_post_ra>
// kernel: base_lm_forward.1
= control target key start
LH: loop header
LB: loop body
LE: loop exit
PB: predicated region body
PF: predicated region fallthrough
CT: control target
= control target key end

     0   :  { %s4436_s0 = inlined_call_operand.vmem [shape: s32[16,1], index: 0, kind: input, shape index: {}]   ;;  %s4437_s1 = inlined_call_operand.vmem [shape: s32[16,1], index: 1, kind: input, shape index: {}]   ;;  %s4438_s2 = inlined_call_operand.vmem [shape: s32[2,8], index: 2, kind: input, shape index: {}]   ;;  %s4439_s3 = inlined_call_operand.vmem [shape: f32[128,32], index: 3, kind: input, shape index: {}]   ;;  %s4440_s4 = inlined_call_operand.vmem [shape: f32[8,32], index: 4, kind: input, shape index: {}]   ;;  %s4441_s5 = inlined_call_operand.vmem [shape: f32[1,32], index: 5, kind: input, shape index: {}]   ;;  %s4442_s6 = inlined_call_operand.vmem [shape: f32[1,32], index: 6, kind: input, shape index: {}]   ;;  %s4443_s7 = inlined_call_operand.vmem [shape: f32[2,32,16], index: 7, kind: input, shape index: {}]   ;;  %s4444_s8 = inlined_call_operand.vmem [shape: f32[2,1,16], index: 8, kind: input, shape index: {}]   ;;  %s4445_s9 = inlined_call_operand.vmem [shape: f32[2,32,16], index: 9, kind: input, shape index: {}]   ;;  %s4446_s10 = inlined_call_operand.vmem [shape: f32[2,1,16], index: 10, kind: input, shape index: {}]   ;;  %s4447_s11 = inlined_call_operand.vmem [shape: f32[2,32,16], index: 11, kind: input, shape index: {}]   ;;  %s4448_s12 = inlined_call_operand.vmem [shape: f32[2,1,16], index: 12, kind: input, shape index: {}]   ;;  %s4449_s13 = inlined_call_operand.vmem [shape: f32[2,16,32], index: 13, kind: input, shape index: {}]   ;;  %s4450_s14 = inlined_call_operand.vmem [shape: f32[1,32], index: 14, kind: input, shape index: {}]   ;;  %s4451_s15 = inlined_call_operand.vmem [shape: f32[1,32], index: 15, kind: input, shape index: {}]   ;;  %s4452_s16 = inlined_call_operand.vmem [shape: f32[1,32], index: 16, kind: input, shape index: {}]   ;;  %s4453_s17 = inlined_call_operand.vmem [shape: f32[32,64], index: 17, kind: input, shape index: {}]   ;;  %s4454_s18 = inlined_call_operand.vmem [shape: f32[1,64], index: 18, kind: input, shape index: {}]   ;;  %s4455_s19 = inlined_call_operand.vmem [shape: f32[64,32], index: 19, kind: input, shape index: {}]   ;;  %s4456_s20 = inlined_call_operand.vmem [shape: f32[1,32], index: 20, kind: input, shape index: {}]   ;;  %s4457_s21 = inlined_call_operand.vmem [shape: f32[1,32], index: 21, kind: input, shape index: {}]   ;;  %s4458_s22 = inlined_call_operand.vmem [shape: f32[1,32], index: 22, kind: input, shape index: {}]   ;;  %s4459_s23 = inlined_call_operand.vmem [shape: f32[32,32], index: 23, kind: input, shape index: {}]   ;;  %s4460_s24 = inlined_call_operand.vmem [shape: f32[1,32], index: 24, kind: input, shape index: {}]   ;;  %s4461_s25 = inlined_call_operand.vmem [shape: f32[1,32], index: 25, kind: input, shape index: {}]   ;;  %s4462_s26 = inlined_call_operand.vmem [shape: f32[1,32], index: 26, kind: input, shape index: {}]   ;;  %s4463_s27 = inlined_call_operand.vmem [shape: f32[1,128], index: 27, kind: input, shape index: {}]   ;;  %s4464_s28 = inlined_call_operand.hbm [shape: f32[1,1], index: 28, kind: output, shape index: {}]  }
   0x1   :  { %4474 = sst [smem:[#allocation5_spill]] %s4436_s0 }
   0x2   :  { %4475 = sst [smem:[#allocation6_spill]] %s4437_s1 }
   0x3   :  { %4476 = sst [smem:[#allocation7_spill]] %s4438_s2 }
   0x4   :  { %4477 = sst [smem:[#allocation8_spill]] %s4439_s3 }
   0x5   :  { %4478 = sst [smem:[#allocation9_spill]] %s4440_s4 }
   0x6   :  { %4479 = sst [smem:[#allocation10_spill]] %s4441_s5 }
   0x7   :  { %4480 = sst [smem:[#allocation11_spill]] %s4442_s6 }
   0x8   :  { %4481 = sst [smem:[#allocation12_spill]] %s4443_s7 }
   0x9   :  { %4482 = sst [smem:[#allocation13_spill]] %s4444_s8 }
   0xa   :  { %4483 = sst [smem:[#allocation14_spill]] %s4445_s9 }
   0xb   :  { %4484 = sst [smem:[#allocation15_spill]] %s4446_s10 }
   0xc   :  { %4485 = sst [smem:[#allocation16_spill]] %s4447_s11 }
   0xd   :  { %4486 = sst [smem:[#allocation17_spill]] %s4448_s12 }
   0xe   :  { %4487 = sst [smem:[#allocation18_spill]] %s4458_s22 }
   0xf   :  { %s4488_s9 = sld [smem:[#allocation5_spill]]  ;;  %s4489_s22 = sld [smem:[#allocation8_spill]]  ;;  %v3644_v2 = vmov 0  }
  0x10   :  { %3566 = vset.pattern.permute.xlu0 %v3644_v2  ;;  %3567 = vset.pattern.permute.xlu1 %v3644_v2 }
  0x15   :  { %v90_v0 = vld [vmem:[%s4488_s9] sm:$0xff]  ;;  %v93_v3 = vld [vmem:[%s4489_s22 + $0x8] sm:$0xff]  ;;  %v94_v4 = vld [vmem:[%s4489_s22 + $0x10] sm:$0xff] }
  0x16   :  { %v92_v1 = vld [vmem:[%s4489_s22] sm:$0xff]  ;;  %v95_v5 = vld [vmem:[%s4489_s22 + $0x18] sm:$0xff]  ;;  %111 = vperm.xlu0 %3566, %v90_v0   ;;  %v91_v8 = vld [vmem:[%s4488_s9 + $0x8] sm:$0xff] }
  0x17   :  { %v3810_v6 = vpack.c.bf16 %v93_v3, %v92_v1  ;;  %v3812_v7 = vpack.c.bf16 %v95_v5, %v94_v4  ;;  %v96_v9 = vld [vmem:[%s4489_s22 + $0x20] sm:$0xff]  ;;  %v97_v10 = vld [vmem:[%s4489_s22 + $0x28] sm:$0xff] }
  0x18   :  { %v3826_v11 = vpack.c.bf16 %v97_v10, %v96_v9 }
  0x19   :  { %3365 = vmatprep.subr.bf16.mxu1 %v3810_v6 }
  0x1a   :  { %3367 = vmatpush3.bf16.msra.mxu1 %v3810_v6  ;;  %114 = vperm.xlu0 %3566, %v91_v8  }
  0x1b   :  { %3369 = vmatprep.subr.bf16.mxu1 %v3812_v7 }
  0x1c   :  { %33 = vsyncpa [#allocation3], 0  ;;  %v98_v12 = vld [vmem:[%s4489_s22 + $0x30] sm:$0xff]  ;;  %v99_v13 = vld [vmem:[%s4489_s22 + $0x38] sm:$0xff]  ;;  %v108_v27 = vlaneseq  ;;  %v3645_v30 = vmov 1.0   ;;  %s4490_s2 = sld [smem:[#allocation9_spill]] }
  0x1d   :  { %v3836_v14 = vpack.c.bf16 %v99_v13, %v98_v12  ;;  %v100_v15 = vld [vmem:[%s4489_s22 + $0x40] sm:$0xff]  ;;  %v101_v16 = vld [vmem:[%s4489_s22 + $0x48] sm:$0xff]  ;;  %v102_v18 = vld [vmem:[%s4489_s22 + $0x50] sm:$0xff]  ;;  %vm200_vm2 = vcmask 261120   ;;  %s4491_s1 = sld [smem:[#allocation12_spill]]  ;;  %v3646_v48 = vmov 0.0|0.0  }
  0x1e   :  { %3371 = vmatpush3.bf16.msra.mxu1 %v3812_v7  ;;  %v3846_v17 = vpack.c.bf16 %v101_v16, %v100_v15  ;;  %v103_v19 = vld [vmem:[%s4489_s22 + $0x58] sm:$0xff]  ;;  %v104_v21 = vld [vmem:[%s4489_s22 + $0x60] sm:$0xff]  ;;  %v105_v22 = vld [vmem:[%s4489_s22 + $0x68] sm:$0xff]  ;;  %v3882_v28 = vand.u32 127, %v108_v27  ;;  %3414 = vmatprep.subr.bf16.mxu0 %v3646_v48  ;;  %vm3647_vm3 = vmmov 0   ;;  %v3648_v56 = vmov 0.0  }
  0x1f   :  { %3373 = vmatprep.subr.bf16.mxu1 %v3826_v11  ;;  %v3856_v20 = vpack.c.bf16 %v103_v19, %v102_v18  ;;  %v3866_v23 = vpack.c.bf16 %v105_v22, %v104_v21  ;;  %v106_v24 = vld [vmem:[%s4489_s22 + $0x70] sm:$0xff]  ;;  %v107_v25 = vld [vmem:[%s4489_s22 + $0x78] sm:$0xff]  ;;  %3139 = vmatprep.mubr.msk.f32.mxu0 %vm3647_vm3, %v3648_v56  ;;  %s4492_s8 = sld [smem:[#allocation10_spill]]  ;;  %s4493_s3 = sld [smem:[#allocation14_spill]]  ;;  %vm494_vm4 = vcmask 130048   ;;  %vm577_vm5 = vcmask 64512   ;;  %vm4337_vm7 = vmpackc.low %vm200_vm2, %vm200_vm2 }
  0x20   :  { %v3876_v26 = vpack.c.bf16 %v107_v25, %v106_v24  ;;  %s4494_s22 = sld [smem:[#allocation16_spill]]  ;;  %s4496_s6 = sld [smem:[#allocation15_spill]]  ;;  %vm2301_vm6 = vcmask 523264   ;;  %vm2773_vm14 = vcmask 7168   ;;  %vm2795_vm15 = vcmask 0  }
  0x21   :  { %s4497_s11 = sld [smem:[#allocation13_spill]]  ;;  %s4498_s7 = sld [smem:[#allocation17_spill]] }
  0x22   :  { %3375 = vmatpush3.bf16.msra.mxu1 %v3826_v11  ;;  %v122_v32 = vld [vmem:[%s4490_s2] sm:$0xff]  ;;  %s4499_s4 = sld [smem:[#allocation7_spill]] }
  0x23   :  { %3377 = vmatprep.subr.bf16.mxu1 %v3836_v14  ;;  %v248_v43 = vld [vmem:[%s4491_s1] sm:$0xff]  ;;  %v249_v44 = vld [vmem:[%s4491_s1 + $0x8] sm:$0xff]  ;;  %v250_v50 = vld [vmem:[%s4491_s1 + $0x10] sm:$0xff] }
  0x24   :  { %v2826_v45 = vld [vmem:[%s4491_s1 + $0x20] sm:$0xff]  ;;  %v3902_v46 = vpack.c.bf16 %v249_v44, %v248_v43  ;;  %v2827_v47 = vld [vmem:[%s4491_s1 + $0x28] sm:$0xff]  ;;  %v251_v51 = vld [vmem:[%s4491_s1 + $0x18] sm:$0xff] }
  0x25   :  { %v3909_v49 = vpack.c.bf16 %v2827_v47, %v2826_v45  ;;  %v2828_v52 = vld [vmem:[%s4491_s1 + $0x30] sm:$0xff]  ;;  %v3924_v53 = vpack.c.bf16 %v251_v51, %v250_v50  ;;  %v2829_v54 = vld [vmem:[%s4491_s1 + $0x38] sm:$0xff]  ;;  %v3942_v61 = vld [vmem:[%s4492_s8] ss:$0 sm:$0xff]  ;;  %s4495_s1 = sld [smem:[#allocation11_spill]] }
  0x26   :  { %3379 = vmatpush3.bf16.msra.mxu1 %v3836_v14  ;;  %v3929_v55 = vpack.c.bf16 %v2829_v54, %v2828_v52  ;;  %v332_v62 = vld [vmem:[%s4493_s3] sm:$0xff]  ;;  %v333_v0 = vld [vmem:[%s4493_s3 + $0x8] sm:$0xff]  ;;  %v334_v9 = vld [vmem:[%s4493_s3 + $0x10] sm:$0xff]  ;;  %v4065_v54 = vshrl.u32 %v108_v27, 7 }
  0x27   :  { %3381 = vmatprep.subr.bf16.mxu1 %v3846_v17  ;;  %3416 = vmatpush3.bf16.msra.mxu0 %v3909_v49  ;;  %v2840_v1 = vld [vmem:[%s4494_s22 + $0x20] sm:$0xff]  ;;  %v2841_v2 = vld [vmem:[%s4494_s22 + $0x28] sm:$0xff]  ;;  %v3962_v5 = vpack.c.bf16 %v333_v0, %v332_v62  ;;  %v335_v12 = vld [vmem:[%s4493_s3 + $0x18] sm:$0xff] }
  0x28   :  { %3417 = vmatprep.subr.bf16.mxu0 %v3646_v48  ;;  %v3964_v8 = vpack.c.bf16 %v2841_v2, %v2840_v1  ;;  %v2842_v13 = vld [vmem:[%s4494_s22 + $0x30] sm:$0xff]  ;;  %v2843_v15 = vld [vmem:[%s4494_s22 + $0x38] sm:$0xff]  ;;  %v3987_v16 = vpack.c.bf16 %v335_v12, %v334_v9  ;;  %v413_v19 = vld [vmem:[%s4494_s22] sm:$0xff] }
  0x29   :  { %v3989_v18 = vpack.c.bf16 %v2843_v15, %v2842_v13  ;;  %v414_v21 = vld [vmem:[%s4494_s22 + $0x8] sm:$0xff]  ;;  %v415_v24 = vld [vmem:[%s4494_s22 + $0x10] sm:$0xff]  ;;  %v416_v25 = vld [vmem:[%s4494_s22 + $0x18] sm:$0xff] }
  0x2a   :  { %3383 = vmatpush3.bf16.msra.mxu1 %v3846_v17  ;;  %v4005_v22 = vpack.c.bf16 %v414_v21, %v413_v19  ;;  %v4055_v43 = vld [vmem:[%s4498_s7] ss:$0 sm:$0xff]  ;;  %v2834_v19 = vld [vmem:[%s4493_s3 + $0x28] sm:$0xff] }
  0x2b   :  { %3385 = vmatprep.subr.bf16.mxu1 %v3856_v20  ;;  %3419 = vmatpush3.bf16.msra.mxu0 %v3929_v55  ;;  %v3959_v3 = vld [vmem:[%s4495_s1] ss:$0 sm:$0xff] }
  0x2c   :  { %3426 = vmatprep.subr.bf16.mxu0 %v3646_v48  ;;  %v244_v50 = vld [vmem:[%s4499_s4] sm:$0x3] }
  0x2d   :  { %v245_v51 = vcvt.s32.f32 %v244_v50  ;;  %v2833_v15 = vld [vmem:[%s4493_s3 + $0x20] sm:$0xff] }
  0x2e   :  { %3387 = vmatpush3.bf16.msra.mxu1 %v3856_v20 }
  0x2f   :  { %3389 = vmatprep.subr.bf16.mxu1 %v3866_v23  ;;  %v246_v52 = vsub.f32 1.0, %v245_v51 }
  0x32   :  { %3391 = vmatpush3.bf16.msra.mxu1 %v3866_v23 }
  0x33   :  { %3393 = vmatprep.subr.bf16.mxu1 %v3876_v26 }
  0x36   :  { %3395 = vmatpush3.bf16.msra.mxu1 %v3876_v26 }
  0x37   :  { %3396 = vmatprep.subr.bf16.mxu1 %v3646_v48 }
  0x95   :  { %v112_v29 = vpop.permute.xlu0 %111 }
  0x96   :  { %vm116_vm0 = vcmp.eq.s32.totalorder %v3882_v28, %v112_v29  ;;  %v4020_v29 = vpack.c.bf16 %v416_v25, %v415_v24  ;;  %v4079_v24 = vpack.c.bf16 %v2834_v19, %v2833_v15  ;;  %v663_v15 = vld [vmem:[%s4449_s13 + $0x8] sm:$0xff] }
  0x97   :  { %3085 = vmatprep.mubr.msk.f32.mxu1 %vm116_vm0, %v3645_v30 }
  0x99   :  { %v115_v31 = vpop.permute.xlu0 %114 }
  0x9a   :  { %vm117_vm1 = vcmp.eq.s32.totalorder %v3882_v28, %v115_v31 }
  0x9b   :  { %3086 = vmatmul.mubr.msk.f32.vlgmr.msra.gmra.mrb[0].mxu1 %vm117_vm1, %v3645_v30 }
  0x9c   :  { %3398 = vmatpush3.bf16.msra.mxu1 %v3902_v46  ;;  %3096 = vmatprep.mubr.msk.f32.mxu1 %vm3647_vm3, %v3648_v56 }
  0x9d   :  { %3399 = vmatprep.subr.bf16.mxu1 %v3646_v48 }
  0xa0   :  { %3401 = vmatpush3.bf16.msra.mxu1 %v3924_v53 }
  0xa1   :  { %3402 = vmatprep.subr.bf16.mxu1 %v3646_v48 }
 0x16e   :  { %v3087_v33 = vpop.f32.mrb[0].mxu1 }
 0x16f   :  { %v3889_v34 = vadd.f32 %v3087_v33, %v122_v32  ;;  %v189_v35 = vpop.f32.mrb[1].mxu1 }
 0x170   :  { %v190_v36 = vadd.f32 %v189_v35, %v122_v32  ;;  %v4038_v35 = vld [vmem:[%s4496_s6] ss:$0 sm:$0xff] }
 0x172   :  { %v201_v37 = vsel %vm200_vm2, %v190_v36, 0.0 }
 0x173   :  { %202 = vadd.xlane.f32.xlu1 %v201_v37 }
 0x200   :  { %v203_v38 = vpop.xlane.xlu1 %202 }
 0x201   :  { %v208_v39 = vmul.f32 0.03125, %v203_v38  ;;  %v4045_v38 = vld [vmem:[%s4497_s11] ss:$0 sm:$0xff] }
 0x203   :  { %v210_v40 = vsub.f32 %v190_v36, %v208_v39 }
 0x205   :  { %v212_v41 = vmul.f32 %v210_v40, %v210_v40 }
 0x207   :  { %v214_v42 = vsel %vm200_vm2, %v212_v41, 0.0 }
 0x208   :  { %215 = vadd.xlane.f32.xlu1 %v214_v42 }
 0x295   :  { %v216_v57 = vpop.xlane.xlu1 %215 }
 0x296   :  { %v220_v58 = vmul.f32 0.03125, %v216_v57  ;;  %v4067_v57 = vmul.f32 -1e+09, %v246_v52 }
 0x298   :  { %v222_v59 = vadd.f32 1e-07, %v220_v58  ;;  %v574_v58 = vsub.s32 0, %v4065_v54 }
 0x29a   :  { %3568 = vrsqrt.f32 %v222_v59  ;;  %v575_v59 = vrot.slane %v4067_v57, %v574_v58 }
 0x2a4   :  { %v3569_v60 = vpop.eup %3568 }
 0x2a5   :  { %v226_v63 = vmul.f32 %v3569_v60, %v210_v40 }
 0x2a7   :  { %v234_v4 = vmul.f32 %v3942_v61, %v226_v63 }
 0x2a9   :  { %v3970_v10 = vadd.f32 %v3959_v3, %v234_v4 }
 0x2ab   :  { %3097 = vmatmul.mubr.msk.f32.vlgmr.msra.gmra.mrb[2].mxu1 %vm200_vm2, %v3970_v10  ;;  %3140 = vmatmul.mubr.msk.f32.vlgmr.msra.gmra.mrb[0].mxu0 %vm200_vm2, %v3970_v10 }
 0x2ac   :  { %3404 = vmatpush3.bf16.msra.mxu1 %v3962_v5  ;;  %3428 = vmatpush3.bf16.msra.mxu0 %v3964_v8 }
 0x2ad   :  { %3405 = vmatprep.subr.bf16.mxu1 %v3646_v48  ;;  %3429 = vmatprep.subr.bf16.mxu0 %v3646_v48 }
 0x2ae   :  { %3107 = vmatprep.mubr.msk.f32.mxu1 %vm3647_vm3, %v3648_v56  ;;  %3161 = vmatprep.mubr.msk.f32.mxu0 %vm3647_vm3, %v3648_v56 }
 0x2b0   :  { %3407 = vmatpush3.bf16.msra.mxu1 %v3987_v16  ;;  %3431 = vmatpush3.bf16.msra.mxu0 %v3989_v18 }
 0x2b1   :  { %3408 = vmatprep.subr.bf16.mxu1 %v3646_v48  ;;  %3432 = vmatprep.subr.bf16.mxu0 %v3646_v48 }
 0x2b3   :  { %3108 = vmatmul.mubr.msk.f32.vlgmr.msra.gmra.mrb[4].mxu1 %vm200_vm2, %v3970_v10  ;;  %3162 = vmatmul.mubr.msk.f32.vlgmr.msra.gmra.mrb[2].mxu0 %vm200_vm2, %v3970_v10 }
 0x2b4   :  { %3410 = vmatpush3.bf16.msra.mxu1 %v4005_v22  ;;  %3118 = vmatprep.mubr.msk.f32.mxu1 %vm3647_vm3, %v3648_v56 }
 0x2b5   :  { %3411 = vmatprep.subr.bf16.mxu1 %v3646_v48  ;;  %3178 = vmatprep.mubr.msk.f32.mxu0 %vm3647_vm3, %v3648_v56 }
 0x2b8   :  { %3413 = vmatpush3.bf16.msra.mxu1 %v4020_v29 }
 0x2b9   :  { %3121 = vmatprep.subr.mxu1 %v3648_v56 }
 0x2bb   :  { %3119 = vmatmul.mubr.msk.f32.vlgmr.msra.gmra.mrb[6].mxu1 %vm200_vm2, %v3970_v10 }
 0x2bc   :  { %3123 = vmatprep.mubr.msk.f32.mxu1 %vm3647_vm3, %v3648_v56 }
 0x37e   :  { %v328_v30 = vpop.f32.mrb[2].mxu1  ;;  %v4033_v31 = vpop.f32.mrb[0].mxu0 }
 0x37f   :  { %v3098_v32 = vpop.f32.mrb[3].mxu1  ;;  %v3141_v33 = vpop.f32.mrb[1].mxu0  ;;  %v329_v42 = vadd.f32 %v4045_v38, %v328_v30  ;;  %v2835_v30 = vld [vmem:[%s4493_s3 + $0x30] sm:$0xff] }
 0x380   :  { %v2836_v32 = vld [vmem:[%s4493_s3 + $0x38] sm:$0xff] }
 0x381   :  { %v4089_v33 = vpack.c.bf16 %v2836_v32, %v2835_v30 }
 0x386   :  { %v409_v36 = vpop.f32.mrb[4].mxu1  ;;  %v4040_v37 = vpop.f32.mrb[2].mxu0 }
 0x387   :  { %v410_v39 = vadd.f32 %v4038_v35, %v409_v36  ;;  %v3109_v40 = vpop.f32.mrb[5].mxu1  ;;  %v3163_v41 = vpop.f32.mrb[3].mxu0 }
 0x388   :  { %v4103_v40 = vld [vmem:[%s4496_s6 + $0x1] ss:$0 sm:$0xff]  ;;  %s4503_s6 = sld [smem:[#allocation6_spill]] }
 0x389   :  { %3122 = vmatpush3.xpose.msk.msra.mxu1 %vm494_vm4, %v410_v39 }
 0x38a   :  { %3126 = vmatprep.subr.mxu1 %v3648_v56 }
 0x38c   :  { %3124 = vmatmul.mubr.msk.f32.vlgmr.msra.gmra.mrb[8].mxu1 %vm494_vm4, %v329_v42  ;;  %v4108_v42 = vld [vmem:[%s4497_s11 + $0x1] ss:$0 sm:$0xff] }
 0x38d   :  { %3128 = vmatprep.mubr.msk.f32.mxu1 %vm3647_vm3, %v3648_v56  ;;  %v744_v50 = vadd.f32 %v4108_v42, %v4033_v31 }
 0x38e   :  { %v490_v44 = vpop.f32.mrb[6].mxu1 }
 0x38f   :  { %v491_v45 = vadd.f32 %v4055_v43, %v490_v44  ;;  %v3120_v47 = vpop.f32.mrb[7].mxu1 }
 0x390   :  { %v4114_v47 = vld [vmem:[%s4498_s7 + $0x1] ss:$0 sm:$0xff] }
 0x391   :  { %3127 = vmatpush3.msra.mxu1 %v491_v45  ;;  %v910_v51 = vadd.f32 %v4114_v47, %v4040_v37 }
 0x392   :  { %3420 = vmatprep.subr.bf16.mxu1 %v3646_v48 }
 0x45f   :  { %v567_v60 = vpop.f32.mrb[8].mxu1 }
 0x460   :  { %v571_v62 = vmul.f32 0.25, %v567_v60  ;;  %v3125_v63 = vpop.f32.mrb[9].mxu1 }
 0x462   :  { %v576_v0 = vadd.f32 %v575_v59, %v571_v62 }
 0x464   :  { %v578_v1 = vsel %vm577_vm5, %v576_v0, -inf }
 0x465   :  { %579 = vmax.xlane.f32.xlu0 %v578_v1 }
 0x4f2   :  { %v580_v2 = vpop.xlane.xlu0 %579 }
 0x4f3   :  { %v581_v4 = vsub.f32 %v576_v0, %v580_v2 }
 0x4f5   :  { %v582_v9 = vmul.f32 1.442695, %v581_v4  ;;  %v204_v4 = vsel %vm200_vm2, %v3889_v34, 0.0 }
 0x4f7   :  { %3570 = vpow2.f32 %v582_v9 }
 0x501   :  { %v3571_v27 = vpop.eup %3570 }
 0x502   :  { %v584_v12 = vsel %vm577_vm5, %v3571_v27, 0.0 }
 0x503   :  { %585 = vadd.xlane.f32.xlu1 %v584_v12 }
 0x590   :  { %v586_v13 = vpop.xlane.xlu1 %585 }
 0x591   :  { %3572 = vrcp.f32 %v586_v13  ;;  %v662_v13 = vld [vmem:[%s4449_s13] sm:$0xff] }
 0x592   :  { %v4138_v30 = vpack.c.bf16 %v663_v15, %v662_v13 }
 0x59b   :  { %v3573_v21 = vpop.eup %3572 }
 0x59c   :  { %v588_v25 = vmul.f32 %v3573_v21, %v3571_v27 }
 0x59e   :  { %3129 = vmatmul.mubr.msk.f32.vlgmr.msra.gmra.mrb[10].mxu1 %vm577_vm5, %v588_v25 }
 0x59f   :  { %3422 = vmatpush3.bf16.msra.mxu1 %v4079_v24  ;;  %3150 = vmatprep.mubr.msk.f32.mxu1 %vm3647_vm3, %v3648_v56 }
 0x5a0   :  { %3423 = vmatprep.subr.bf16.mxu1 %v3646_v48 }
 0x5a3   :  { %3425 = vmatpush3.bf16.msra.mxu1 %v4089_v33 }
 0x5a4   :  { %3164 = vmatprep.subr.mxu1 %v3648_v56 }
 0x5a6   :  { %3151 = vmatmul.mubr.msk.f32.vlgmr.msra.gmra.mrb[12].mxu1 %vm200_vm2, %v3970_v10 }
 0x5a7   :  { %3166 = vmatprep.mubr.msk.f32.mxu1 %vm3647_vm3, %v3648_v56 }
 0x671   :  { %v658_v36 = vpop.f32.mrb[10].mxu1 }
 0x672   :  { %v3130_v39 = vpop.f32.mrb[11].mxu1 }
 0x673   :  { %v2851_v39 = vld [vmem:[%s4449_s13 + $0x18] sm:$0xff] }
 0x679   :  { %v826_v41 = vpop.f32.mrb[12].mxu1 }
 0x67a   :  { %v827_v44 = vadd.f32 %v4103_v40, %v826_v41  ;;  %v3152_v45 = vpop.f32.mrb[13].mxu1 }
 0x67c   :  { %3165 = vmatpush3.xpose.msk.msra.mxu1 %vm494_vm4, %v827_v44 }
 0x67d   :  { %3169 = vmatprep.subr.mxu1 %v3648_v56 }
 0x67f   :  { %3167 = vmatmul.mubr.msk.f32.vlgmr.msra.gmra.mrb[14].mxu1 %vm494_vm4, %v744_v50 }
 0x680   :  { %3170 = vmatpush3.msra.mxu1 %v910_v51  ;;  %3171 = vmatprep.mubr.msk.f32.mxu1 %vm3647_vm3, %v3648_v56 }
 0x681   :  { %3435 = vmatprep.subr.bf16.mxu1 %v3646_v48 }
 0x752   :  { %v985_v52 = vpop.f32.mrb[14].mxu1 }
 0x753   :  { %v989_v58 = vmul.f32 0.25, %v985_v52  ;;  %v3168_v60 = vpop.f32.mrb[15].mxu1 }
 0x755   :  { %v990_v62 = vadd.f32 %v989_v58, %v575_v59 }
 0x757   :  { %v991_v63 = vsel %vm577_vm5, %v990_v62, -inf }
 0x758   :  { %992 = vmax.xlane.f32.xlu1 %v991_v63 }
 0x7e5   :  { %v993_v31 = vpop.xlane.xlu1 %992 }
 0x7e6   :  { %v994_v0 = vsub.f32 %v990_v62, %v993_v31 }
 0x7e8   :  { %v995_v1 = vmul.f32 1.442695, %v994_v0 }
 0x7ea   :  { %3574 = vpow2.f32 %v995_v1 }
 0x7f4   :  { %v3575_v37 = vpop.eup %3574 }
 0x7f5   :  { %v997_v2 = vsel %vm577_vm5, %v3575_v37, 0.0 }
 0x7f6   :  { %998 = vadd.xlane.f32.xlu1 %v997_v2  ;;  %v1516_v2 = vsub.s32 1, %v4065_v54 }
 0x7fa   :  { %205 = vadd.xlane.f32.xlu1 %v204_v4 }
 0x883   :  { %v999_v9 = vpop.xlane.xlu1 %998 }
 0x884   :  { %3576 = vrcp.f32 %v999_v9 }
 0x887   :  { %v206_v27 = vpop.xlane.xlu1 %205 }
 0x888   :  { %v209_v12 = vmul.f32 0.03125, %v206_v27 }
 0x88a   :  { %v211_v59 = vsub.f32 %v3889_v34, %v209_v12  ;;  %v2850_v34 = vld [vmem:[%s4449_s13 + $0x10] sm:$0xff] }
 0x88c   :  { %v213_v19 = vmul.f32 %v211_v59, %v211_v59 }
 0x88e   :  { %v3577_v21 = vpop.eup %3576  ;;  %v217_v25 = vsel %vm200_vm2, %v213_v19, 0.0 }
 0x88f   :  { %v1001_v32 = vmul.f32 %v3577_v21, %v3575_v37  ;;  %218 = vadd.xlane.f32.xlu1 %v217_v25 }
 0x891   :  { %3172 = vmatmul.mubr.msk.f32.vlgmr.msra.gmra.mrb[16].mxu1 %vm577_vm5, %v1001_v32 }
 0x892   :  { %3437 = vmatpush3.bf16.msra.mxu1 %v4138_v30  ;;  %3185 = vmatprep.mubr.msk.f32.mxu1 %vm3647_vm3, %v3648_v56 }
 0x893   :  { %3444 = vmatprep.subr.bf16.mxu1 %v3646_v48 }
 0x895   :  { %3186 = vmatmul.mubr.msk.f32.vlgmr.msra.gmra.mrb[18].mxu1 %vm494_vm4, %v658_v36  ;;  %v3433_v36 = vpack.c.bf16 %v2851_v39, %v2850_v34 }
 0x896   :  { %3446 = vmatpush3.bf16.msra.mxu1 %v3962_v5  ;;  %3207 = vmatprep.mubr.msk.f32.mxu1 %vm3647_vm3, %v3648_v56 }
 0x897   :  { %3447 = vmatprep.subr.bf16.mxu1 %v3646_v48  ;;  %3434 = vmatpush3.bf16.msra.mxu0 %v3433_v36 }
 0x898   :  { %3438 = vmatprep.subr.bf16.mxu0 %v3646_v48 }
 0x89a   :  { %3449 = vmatpush3.bf16.msra.mxu1 %v3987_v16 }
 0x89b   :  { %3221 = vmatprep.subr.mxu1 %v3648_v56 }
 0x91c   :  { %v219_v5 = vpop.xlane.xlu1 %218 }
 0x91d   :  { %v221_v41 = vmul.f32 0.03125, %v219_v5 }
 0x91f   :  { %v223_v44 = vadd.f32 1e-07, %v221_v41 }
 0x921   :  { %3578 = vrsqrt.f32 %v223_v44 }
 0x92b   :  { %v3579_v45 = vpop.eup %3578 }
 0x92c   :  { %v227_v16 = vmul.f32 %v3579_v45, %v211_v59 }
 0x92e   :  { %v235_v50 = vmul.f32 %v3942_v61, %v227_v16 }
 0x930   :  { %v4161_v51 = vadd.f32 %v3959_v3, %v235_v50 }
 0x932   :  { %3208 = vmatmul.mubr.msk.f32.vlgmr.msra.gmra.mrb[20].mxu1 %vm200_vm2, %v4161_v51 }
 0x933   :  { %3223 = vmatprep.mubr.msk.f32.mxu1 %vm3647_vm3, %v3648_v56 }
 0x964   :  { %v1071_v52 = vpop.f32.mrb[16].mxu1 }
 0x965   :  { %v3173_v58 = vpop.f32.mrb[17].mxu1  ;;  %3179 = vmatmul.mubr.msk.f32.vlgmr.msra.gmra.mrb[4].mxu0 %vm494_vm4, %v1071_v52 }
 0x966   :  { %3440 = vmatpush3.bf16.msra.mxu0 %v3902_v46  ;;  %3196 = vmatprep.mubr.msk.f32.mxu0 %vm3647_vm3, %v3648_v56 }
 0x967   :  { %3441 = vmatprep.subr.bf16.mxu0 %v3646_v48 }
 0x968   :  { %v1220_v61 = vpop.f32.mrb[18].mxu1 }
 0x969   :  { %v3187_v3 = vpop.f32.mrb[19].mxu1 }
 0x96a   :  { %3443 = vmatpush3.bf16.msra.mxu0 %v3924_v53 }
 0x96b   :  { %3450 = vmatprep.subr.bf16.mxu0 %v3646_v48 }
 0x96d   :  { %3197 = vmatmul.mubr.msk.f32.vlgmr.msra.gmra.mrb[6].mxu0 %vm200_vm2, %v4161_v51 }
 0x96e   :  { %3452 = vmatpush3.bf16.msra.mxu0 %v4005_v22  ;;  %3218 = vmatprep.mubr.msk.f32.mxu0 %vm3647_vm3, %v3648_v56 }
 0x96f   :  { %3453 = vmatprep.subr.bf16.mxu0 %v3646_v48 }
 0x972   :  { %3455 = vmatpush3.bf16.msra.mxu0 %v4020_v29 }
 0x973   :  { %3456 = vmatprep.subr.bf16.mxu0 %v3646_v48 }
 0x975   :  { %3219 = vmatmul.mubr.msk.f32.vlgmr.msra.gmra.mrb[8].mxu0 %vm200_vm2, %v4161_v51 }
 0x976   :  { %3458 = vmatpush3.bf16.msra.mxu0 %v3909_v49  ;;  %3239 = vmatprep.mubr.msk.f32.mxu0 %vm3647_vm3, %v3648_v56 }
 0x977   :  { %3459 = vmatprep.subr.bf16.mxu0 %v3646_v48 }
 0x97a   :  { %3461 = vmatpush3.bf16.msra.mxu0 %v3929_v55 }
 0x97b   :  { %3468 = vmatprep.subr.bf16.mxu0 %v3646_v48 }
 0x97d   :  { %3240 = vmatmul.mubr.msk.f32.vlgmr.msra.gmra.mrb[10].mxu0 %vm200_vm2, %v4161_v51 }
 0x97e   :  { %3470 = vmatpush3.bf16.msra.mxu0 %v3964_v8  ;;  %3261 = vmatprep.mubr.msk.f32.mxu0 %vm3647_vm3, %v3648_v56 }
 0x97f   :  { %3471 = vmatprep.subr.bf16.mxu0 %v3646_v48 }
 0x982   :  { %3473 = vmatpush3.bf16.msra.mxu0 %v3989_v18 }
 0x983   :  { %3474 = vmatprep.subr.bf16.mxu0 %v3646_v48 }
 0x985   :  { %3262 = vmatmul.mubr.msk.f32.vlgmr.msra.gmra.mrb[12].mxu0 %vm200_vm2, %v4161_v51 }
 0x986   :  { %3476 = vmatpush3.bf16.msra.mxu0 %v3433_v36  ;;  %3278 = vmatprep.mubr.msk.f32.mxu0 %vm3647_vm3, %v3648_v56 }
 0xa05   :  { %v1363_v46 = vpop.f32.mrb[20].mxu1 }
 0xa06   :  { %v1364_v49 = vadd.f32 %v4038_v35, %v1363_v46  ;;  %v3209_v53 = vpop.f32.mrb[21].mxu1 }
 0xa08   :  { %3222 = vmatpush3.xpose.msk.msra.mxu1 %vm494_vm4, %v1364_v49 }
 0xa09   :  { %3226 = vmatprep.subr.mxu1 %v3648_v56 }
 0xa38   :  { %v1147_v55 = vpop.f32.mrb[4].mxu0 }
 0xa39   :  { %v1221_v8 = vadd.f32 %v1220_v61, %v1147_v55  ;;  %v3180_v18 = vpop.f32.mrb[5].mxu0 }
 0xa40   :  { %v1293_v22 = vpop.f32.mrb[6].mxu0 }
 0xa41   :  { %v1294_v29 = vadd.f32 %v4045_v38, %v1293_v22  ;;  %v3198_v60 = vpop.f32.mrb[7].mxu0  ;;  %v1517_v38 = vrot.slane %v4067_v57, %v1516_v2 }
 0xa43   :  { %3224 = vmatmul.mubr.msk.f32.vlgmr.msra.gmra.mrb[22].mxu1 %vm494_vm4, %v1294_v29 }
 0xa44   :  { %3228 = vmatprep.mubr.msk.f32.mxu1 %vm3647_vm3, %v3648_v56 }
 0xa48   :  { %v1433_v62 = vpop.f32.mrb[8].mxu0 }
 0xa49   :  { %v1434_v35 = vadd.f32 %v4055_v43, %v1433_v62  ;;  %v3220_v63 = vpop.f32.mrb[9].mxu0 }
 0xa4b   :  { %3227 = vmatpush3.msra.mxu1 %v1434_v35 }
 0xa4c   :  { %3462 = vmatprep.subr.bf16.mxu1 %v3646_v48 }
 0xa50   :  { %v1669_v31 = vpop.f32.mrb[10].mxu0 }
 0xa51   :  { %v3241_v0 = vpop.f32.mrb[11].mxu0  ;;  %v1670_v5 = vadd.f32 %v4108_v42, %v1669_v31 }
 0xa52   :  { %v2869_v0 = vld [vmem:[%s4451_s15] ss:$0 sm:$0xff] }
 0xa58   :  { %v1809_v1 = vpop.f32.mrb[12].mxu0 }
 0xa59   :  { %v3263_v37 = vpop.f32.mrb[13].mxu0 }
 0xb16   :  { %v1509_v4 = vpop.f32.mrb[22].mxu1 }
 0xb17   :  { %v1513_v9 = vmul.f32 0.25, %v1509_v4  ;;  %v3225_v27 = vpop.f32.mrb[23].mxu1 }
 0xb19   :  { %v1518_v12 = vadd.f32 %v1517_v38, %v1513_v9 }
 0xb1b   :  { %v1519_v59 = vsel %vm577_vm5, %v1518_v12, -inf }
 0xb1c   :  { %1520 = vmax.xlane.f32.xlu1 %v1519_v59 }
 0xba9   :  { %v1521_v43 = vpop.xlane.xlu1 %1520 }
 0xbaa   :  { %v1522_v13 = vsub.f32 %v1518_v12, %v1521_v43 }
 0xbac   :  { %v1523_v15 = vmul.f32 1.442695, %v1522_v13 }
 0xbae   :  { %3580 = vpow2.f32 %v1523_v15 }
 0xbb8   :  { %v3581_v19 = vpop.eup %3580 }
 0xbb9   :  { %v1525_v21 = vsel %vm577_vm5, %v3581_v19, 0.0 }
 0xbba   :  { %1526 = vadd.xlane.f32.xlu1 %v1525_v21 }
 0xc47   :  { %v1527_v25 = vpop.xlane.xlu1 %1526 }
 0xc48   :  { %3582 = vrcp.f32 %v1527_v25 }
 0xc52   :  { %v3583_v54 = vpop.eup %3582 }
 0xc53   :  { %v1529_v32 = vmul.f32 %v3583_v54, %v3581_v19 }
 0xc55   :  { %3229 = vmatmul.mubr.msk.f32.vlgmr.msra.gmra.mrb[24].mxu1 %vm577_vm5, %v1529_v32 }
 0xc56   :  { %3464 = vmatpush3.bf16.msra.mxu1 %v4079_v24  ;;  %3250 = vmatprep.mubr.msk.f32.mxu1 %vm3647_vm3, %v3648_v56 }
 0xc57   :  { %3465 = vmatprep.subr.bf16.mxu1 %v3646_v48 }
 0xc5a   :  { %3467 = vmatpush3.bf16.msra.mxu1 %v4089_v33  ;;  %v1810_v33 = vadd.f32 %v4114_v47, %v1809_v1 }
 0xc5b   :  { %3264 = vmatprep.subr.mxu1 %v3648_v56 }
 0xc5d   :  { %3251 = vmatmul.mubr.msk.f32.vlgmr.msra.gmra.mrb[26].mxu1 %vm200_vm2, %v4161_v51 }
 0xc5e   :  { %3266 = vmatprep.mubr.msk.f32.mxu1 %vm3647_vm3, %v3648_v56 }
 0xd28   :  { %v1599_v57 = vpop.f32.mrb[24].mxu1 }
 0xd29   :  { %v3230_v34 = vpop.f32.mrb[25].mxu1 }
 0xd2a   :  { %v2177_v34 = vld [vmem:[%s4453_s17 + $0x8] sm:$0xff] }
 0xd30   :  { %v1739_v39 = vpop.f32.mrb[26].mxu1 }
 0xd31   :  { %v1740_v24 = vadd.f32 %v4103_v40, %v1739_v39  ;;  %v3252_v36 = vpop.f32.mrb[27].mxu1  ;;  %v2868_v40 = vld [vmem:[%s4450_s14] ss:$0 sm:$0xff]  ;;  %s4500_s14 = sld [smem:[#allocation18_spill]] }
 0xd32   :  { %v2128_v44 = vadd.f32 %v2868_v40, %v1221_v8 }
 0xd33   :  { %3265 = vmatpush3.xpose.msk.msra.mxu1 %vm494_vm4, %v1740_v24  ;;  %v2179_v24 = vld [vmem:[%s4453_s17 + $0x18] sm:$0xff] }
 0xd34   :  { %3269 = vmatprep.subr.mxu1 %v3648_v56  ;;  %v2130_v47 = vadd.f32 %v2128_v44, %v3970_v10 }
 0xd36   :  { %3267 = vmatmul.mubr.msk.f32.vlgmr.msra.gmra.mrb[28].mxu1 %vm494_vm4, %v1670_v5  ;;  %v2134_v52 = vsel %vm200_vm2, %v2130_v47, 0.0 }
 0xd37   :  { %3270 = vmatpush3.msra.mxu1 %v1810_v33  ;;  %3271 = vmatprep.mubr.msk.f32.mxu1 %vm3647_vm3, %v3648_v56 }
 0xd38   :  { %3477 = vmatprep.subr.bf16.mxu1 %v3646_v48 }
 0xe09   :  { %v1885_v41 = vpop.f32.mrb[28].mxu1 }
 0xe0a   :  { %v1889_v45 = vmul.f32 0.25, %v1885_v41  ;;  %v3268_v42 = vpop.f32.mrb[29].mxu1 }
 0xe0c   :  { %v1890_v16 = vadd.f32 %v1889_v45, %v1517_v38 }
 0xe0e   :  { %v1891_v50 = vsel %vm577_vm5, %v1890_v16, -inf }
 0xe0f   :  { %1892 = vmax.xlane.f32.xlu1 %v1891_v50  ;;  %v2287_v50 = vld [vmem:[%s4455_s19 + $0x8] sm:$0xff] }
 0xe13   :  { %2135 = vadd.xlane.f32.xlu1 %v2134_v52  ;;  %v2288_v52 = vld [vmem:[%s4455_s19 + $0x10] sm:$0xff] }
 0xe9c   :  { %v1893_v58 = vpop.xlane.xlu1 %1892 }
 0xe9d   :  { %v1894_v61 = vsub.f32 %v1890_v16, %v1893_v58  ;;  %v2286_v16 = vld [vmem:[%s4455_s19] sm:$0xff]  ;;  %v2289_v58 = vld [vmem:[%s4455_s19 + $0x18] sm:$0xff] }
 0xe9f   :  { %v1895_v48 = vmul.f32 1.442695, %v1894_v61  ;;  %v3492_v61 = vpack.c.bf16 %v2289_v58, %v2288_v52  ;;  %v2431_v52 = vld [vmem:[%s4459_s23 + $0x10] sm:$0xff]  ;;  %v2432_v58 = vld [vmem:[%s4459_s23 + $0x18] sm:$0xff] }
 0xea0   :  { %v2136_v3 = vpop.xlane.xlu1 %2135 }
 0xea1   :  { %3584 = vpow2.f32 %v1895_v48  ;;  %v2140_v46 = vmul.f32 0.03125, %v2136_v3  ;;  %v2290_v48 = vld [vmem:[%s4455_s19 + $0x20] sm:$0xff]  ;;  %v2291_v3 = vld [vmem:[%s4455_s19 + $0x28] sm:$0xff] }
 0xea3   :  { %v2142_v49 = vsub.f32 %v2130_v47, %v2140_v46  ;;  %v3488_v47 = vpack.c.bf16 %v2287_v50, %v2286_v16  ;;  %v3496_v46 = vpack.c.bf16 %v2291_v3, %v2290_v48  ;;  %v2430_v50 = vld [vmem:[%s4459_s23 + $0x8] sm:$0xff] }
 0xea5   :  { %v2144_v53 = vmul.f32 %v2142_v49, %v2142_v49 }
 0xea7   :  { %v2146_v55 = vsel %vm200_vm2, %v2144_v53, 0.0  ;;  %v2293_v53 = vld [vmem:[%s4455_s19 + $0x38] sm:$0xff] }
 0xea8   :  { %2147 = vadd.xlane.f32.xlu1 %v2146_v55 }
 0xeab   :  { %v3585_v8 = vpop.eup %3584 }
 0xeac   :  { %v1897_v18 = vsel %vm577_vm5, %v3585_v8, 0.0 }
 0xead   :  { %1898 = vadd.xlane.f32.xlu0 %v1897_v18 }
 0xf35   :  { %v2148_v60 = vpop.xlane.xlu1 %2147 }
 0xf36   :  { %v2152_v62 = vmul.f32 0.03125, %v2148_v60 }
 0xf38   :  { %v2154_v35 = vadd.f32 1e-07, %v2152_v62 }
 0xf3a   :  { %v1899_v10 = vpop.xlane.xlu0 %1898 }
 0xf3b   :  { %3586 = vrcp.f32 %v1899_v10 }
 0xf3c   :  { %3588 = vrsqrt.f32 %v2154_v35 }
 0xf45   :  { %v3587_v22 = vpop.eup %3586 }
 0xf46   :  { %v1901_v29 = vmul.f32 %v3587_v22, %v3585_v8  ;;  %v3589_v63 = vpop.eup %3588  ;;  %v2871_v8 = vld [vmem:[%s4454_s18] ss:$0 sm:$0xff] }
 0xf47   :  { %v2158_v31 = vmul.f32 %v3589_v63, %v2142_v49  ;;  %v2292_v49 = vld [vmem:[%s4455_s19 + $0x30] sm:$0xff] }
 0xf48   :  { %3272 = vmatmul.mubr.msk.f32.vlgmr.msra.gmra.mrb[30].mxu1 %vm577_vm5, %v1901_v29  ;;  %v3500_v55 = vpack.c.bf16 %v2293_v53, %v2292_v49 }
 0xf49   :  { %3479 = vmatpush3.bf16.msra.mxu1 %v4138_v30  ;;  %3285 = vmatprep.mubr.msk.f32.mxu1 %vm3647_vm3, %v3648_v56  ;;  %v2166_v1 = vmul.f32 %v2869_v0, %v2158_v31  ;;  %v2870_v30 = vld [vmem:[%s4452_s16] ss:$0 sm:$0xff] }
 0xf4a   :  { %3489 = vmatprep.subr.bf16.mxu1 %v3488_v47 }
 0xf4b   :  { %v4254_v2 = vadd.f32 %v2870_v30, %v2166_v1 }
 0xf4c   :  { %3286 = vmatmul.mubr.msk.f32.vlgmr.msra.gmra.mrb[32].mxu1 %vm494_vm4, %v1599_v57  ;;  %v2176_v57 = vld [vmem:[%s4453_s17] sm:$0xff] }
 0xf4d   :  { %v3480_v39 = vpack.c.bf16 %v2177_v34, %v2176_v57  ;;  %3491 = vmatpush3.bf16.msra.mxu1 %v3488_v47 }
 0xf4e   :  { %3493 = vmatprep.subr.bf16.mxu1 %v3492_v61 }
 0xf4f   :  { %3481 = vmatprep.subr.bf16.mxu0 %v3480_v39 }
 0xf51   :  { %3495 = vmatpush3.bf16.msra.mxu1 %v3492_v61  ;;  %v3508_v61 = vpack.c.bf16 %v2432_v58, %v2431_v52  ;;  %v2882_v52 = vld [vmem:[%s4461_s25] ss:$0 sm:$0xff] }
 0xf52   :  { %3497 = vmatprep.subr.bf16.mxu1 %v3496_v46 }
 0xf55   :  { %3499 = vmatpush3.bf16.msra.mxu1 %v3496_v46 }
 0xf56   :  { %3501 = vmatprep.subr.bf16.mxu1 %v3500_v55 }
 0xf59   :  { %3503 = vmatpush3.bf16.msra.mxu1 %v3500_v55 }
0x101b   :  { %v1971_v37 = vpop.f32.mrb[30].mxu1 }
0x101c   :  { %v3273_v38 = vpop.f32.mrb[31].mxu1  ;;  %3279 = vmatmul.mubr.msk.f32.vlgmr.msra.gmra.mrb[14].mxu0 %vm494_vm4, %v1971_v37 }
0x101d   :  { %3296 = vmatprep.mubr.msk.f32.mxu0 %vm200_vm2, %v4254_v2  ;;  %3483 = vmatpush3.bf16.msra.mxu0 %v3480_v39 }
0x101f   :  { %v2117_v4 = vpop.f32.mrb[32].mxu1 }
0x1020   :  { %v3287_v9 = vpop.f32.mrb[33].mxu1 }
0x10ef   :  { %v2044_v27 = vpop.f32.mrb[14].mxu0 }
0x10f0   :  { %v2118_v12 = vadd.f32 %v2117_v4, %v2044_v27  ;;  %v3280_v59 = vpop.f32.mrb[15].mxu0 }
0x10f2   :  { %v2129_v43 = vadd.f32 %v2868_v40, %v2118_v12 }
0x10f4   :  { %v2131_v13 = vadd.f32 %v2129_v43, %v4161_v51  ;;  %v2178_v51 = vld [vmem:[%s4453_s17 + $0x10] sm:$0xff] }
0x10f5   :  { %v3484_v36 = vpack.c.bf16 %v2179_v24, %v2178_v51 }
0x10f6   :  { %v2137_v15 = vsel %vm200_vm2, %v2131_v13, 0.0 }
0x10f7   :  { %2138 = vadd.xlane.f32.xlu0 %v2137_v15  ;;  %3485 = vmatprep.subr.bf16.mxu0 %v3484_v36 }
0x10f8   :  { %3487 = vmatpush3.bf16.msra.mxu0 %v3484_v36 }
0x1184   :  { %v2139_v19 = vpop.xlane.xlu0 %2138 }
0x1185   :  { %v2141_v21 = vmul.f32 0.03125, %v2139_v19  ;;  %v2874_v19 = vld [vmem:[%s4456_s20] ss:$0 sm:$0xff] }
0x1187   :  { %v2143_v25 = vsub.f32 %v2131_v13, %v2141_v21 }
0x1189   :  { %v2145_v54 = vmul.f32 %v2143_v25, %v2143_v25 }
0x118b   :  { %v2149_v32 = vsel %vm200_vm2, %v2145_v54, 0.0 }
0x118c   :  { %2150 = vadd.xlane.f32.xlu0 %v2149_v32 }
0x1219   :  { %v2151_v5 = vpop.xlane.xlu0 %2150 }
0x121a   :  { %v2153_v33 = vmul.f32 0.03125, %v2151_v5 }
0x121c   :  { %v2155_v40 = vadd.f32 1e-07, %v2153_v33 }
0x121e   :  { %3590 = vrsqrt.f32 %v2155_v40 }
0x1228   :  { %v3591_v41 = vpop.eup %3590 }
0x1229   :  { %v2159_v44 = vmul.f32 %v3591_v41, %v2143_v25 }
0x122b   :  { %v2167_v45 = vmul.f32 %v2869_v0, %v2159_v44 }
0x122d   :  { %v2175_v42 = vadd.f32 %v2870_v30, %v2167_v45 }
0x122f   :  { %3297 = vmatmul.mubr.msk.f32.vlgmr.msra.gmra.mrb[16].mxu0 %vm200_vm2, %v2175_v42 }
0x1302   :  { %v3298_v18 = vpop.f32.mrb[16].mxu0 }
0x1303   :  { %v2265_v10 = vadd.f32 %v3298_v18, %v2871_v8  ;;  %v2259_v22 = vpop.f32.mrb[17].mxu0  ;;  %v2877_v18 = vld [vmem:[%s4457_s21] ss:$0 sm:$0xff] }
0x1304   :  { %v2260_v29 = vadd.f32 %v2871_v8, %v2259_v22 }
0x1305   :  { %v2269_v60 = vmul.f32 %v2265_v10, %v2265_v10 }
0x1306   :  { %v2268_v62 = vmul.f32 %v2260_v29, %v2260_v29 }
0x1307   :  { %v2271_v35 = vmul.f32 %v2269_v60, %v2265_v10  ;;  %v2878_v60 = vld [vmem:[%s4500_s14] ss:$0 sm:$0xff] }
0x1308   :  { %v2270_v63 = vmul.f32 %v2268_v62, %v2260_v29 }
0x1309   :  { %v2273_v31 = vmul.f32 0.044715, %v2271_v35 }
0x130a   :  { %v2272_v0 = vmul.f32 0.044715, %v2270_v63 }
0x130b   :  { %v2275_v1 = vadd.f32 %v2273_v31, %v2265_v10 }
0x130c   :  { %v2274_v30 = vadd.f32 %v2272_v0, %v2260_v29  ;;  %v2879_v0 = vld [vmem:[%s4460_s24] ss:$0 sm:$0xff] }
0x130d   :  { %v2277_v37 = vmul.f32 0.7978846, %v2275_v1 }
0x130e   :  { %v2276_v38 = vmul.f32 0.7978846, %v2274_v30 }
0x130f   :  { %3592 = vtanh.f32 %v2277_v37 }
0x1310   :  { %3594 = vtanh.f32 %v2276_v38 }
0x1319   :  { %v3593_v4 = vpop.eup %3592 }
0x131a   :  { %v3595_v9 = vpop.eup %3594  ;;  %v2281_v27 = vadd.f32 1.0, %v3593_v4 }
0x131b   :  { %v2280_v12 = vadd.f32 1.0, %v3595_v9 }
0x131c   :  { %v2283_v59 = vmul.f32 0.5, %v2281_v27 }
0x131d   :  { %v2282_v43 = vmul.f32 0.5, %v2280_v12 }
0x131e   :  { %v2285_v15 = vmul.f32 %v2283_v59, %v2265_v10 }
0x131f   :  { %v2284_v13 = vmul.f32 %v2282_v43, %v2260_v29 }
0x1321   :  { %3315 = vmatprep.mubr.msk.f32.mxu1 %vm2301_vm6, %v2284_v13 }
0x1322   :  { %3316 = vmatmul.mubr.msk.f32.vlgmr.msra.gmra.mrb[34].mxu1 %vm2301_vm6, %v2285_v15 }
0x13f5   :  { %v3317_v21 = vpop.f32.mrb[34].mxu1 }
0x13f6   :  { %v2380_v25 = vadd.f32 %v3317_v21, %v2874_v19  ;;  %v2374_v54 = vpop.f32.mrb[35].mxu1 }
0x13f7   :  { %v2375_v32 = vadd.f32 %v2874_v19, %v2374_v54 }
0x13f8   :  { %v2384_v57 = vadd.f32 %v2380_v25, %v2175_v42 }
0x13f9   :  { %v2383_v34 = vadd.f32 %v2375_v32, %v4254_v2  ;;  %v2429_v2 = vld [vmem:[%s4459_s23] sm:$0xff] }
0x13fa   :  { %v2390_v39 = vsel %vm200_vm2, %v2384_v57, 0.0  ;;  %v3504_v47 = vpack.c.bf16 %v2430_v50, %v2429_v2 }
0x13fb   :  { %2391 = vadd.xlane.f32.xlu0 %v2390_v39  ;;  %v2387_v51 = vsel %vm200_vm2, %v2383_v34, 0.0 }
0x13fc   :  { %2388 = vadd.xlane.f32.xlu1 %v2387_v51  ;;  %3505 = vmatprep.subr.bf16.mxu0 %v3504_v47 }
0x13fd   :  { %3507 = vmatpush3.bf16.msra.mxu0 %v3504_v47 }
0x13fe   :  { %3509 = vmatprep.subr.bf16.mxu0 %v3508_v61 }
0x1401   :  { %3511 = vmatpush3.bf16.msra.mxu0 %v3508_v61 }
0x1402   :  { %3514 = vmatprep.subr.msk.bf16.mxu0 %vm4337_vm7, %v3810_v6 }
0x1488   :  { %v2392_v24 = vpop.xlane.xlu0 %2391 }
0x1489   :  { %v2394_v36 = vmul.f32 0.03125, %v2392_v24  ;;  %v2389_v5 = vpop.xlane.xlu1 %2388 }
0x148a   :  { %v2393_v33 = vmul.f32 0.03125, %v2389_v5 }
0x148b   :  { %v2396_v40 = vsub.f32 %v2384_v57, %v2394_v36 }
0x148c   :  { %v2395_v41 = vsub.f32 %v2383_v34, %v2393_v33 }
0x148d   :  { %v2398_v44 = vmul.f32 %v2396_v40, %v2396_v40 }
0x148e   :  { %v2397_v45 = vmul.f32 %v2395_v41, %v2395_v41 }
0x148f   :  { %v2402_v16 = vsel %vm200_vm2, %v2398_v44, 0.0 }
0x1490   :  { %2403 = vadd.xlane.f32.xlu0 %v2402_v16  ;;  %v2399_v42 = vsel %vm200_vm2, %v2397_v45, 0.0 }
0x1491   :  { %2400 = vadd.xlane.f32.xlu1 %v2399_v42 }
0x151d   :  { %v2404_v48 = vpop.xlane.xlu0 %2403 }
0x151e   :  { %v2406_v3 = vmul.f32 0.03125, %v2404_v48  ;;  %v2401_v46 = vpop.xlane.xlu1 %2400 }
0x151f   :  { %v2405_v49 = vmul.f32 0.03125, %v2401_v46 }
0x1520   :  { %v2408_v53 = vadd.f32 1e-07, %v2406_v3  ;;  %v2883_v3 = vld [vmem:[%s4462_s26] ss:$0 sm:$0xff] }
0x1521   :  { %v2407_v55 = vadd.f32 1e-07, %v2405_v49 }
0x1522   :  { %3596 = vrsqrt.f32 %v2408_v53 }
0x1523   :  { %3598 = vrsqrt.f32 %v2407_v55 }
0x152c   :  { %v3597_v8 = vpop.eup %3596 }
0x152d   :  { %v3599_v10 = vpop.eup %3598  ;;  %v2412_v22 = vmul.f32 %v3597_v8, %v2396_v40  ;;  %v2884_v8 = vld [vmem:[%s4463_s27] ss:$0 sm:$0xff] }
0x152e   :  { %v2411_v29 = vmul.f32 %v3599_v10, %v2395_v41 }
0x152f   :  { %v2420_v62 = vmul.f32 %v2877_v18, %v2412_v22 }
0x1530   :  { %v2419_v35 = vmul.f32 %v2877_v18, %v2411_v29 }
0x1531   :  { %v2428_v31 = vadd.f32 %v2878_v60, %v2420_v62  ;;  %v2721_v62 = vld [vmem:[%s4503_s6] sm:$0xff] }
0x1532   :  { %v2427_v63 = vadd.f32 %v2878_v60, %v2419_v35  ;;  %v3618_v60 = vld [vmem:[%s4488_s9] sm:$0xff] }
0x1533   :  { %vm2719_vm8 = vcmp.ne.s32.totalorder %v3618_v60, 5 }
0x1534   :  { %3326 = vmatprep.mubr.msk.f32.mxu0 %vm200_vm2, %v2427_v63  ;;  %v2723_v35 = vsel %vm2719_vm8, 4294967196, %v2721_v62  ;;  %v3619_v63 = vld [vmem:[%s4488_s9 + $0x8] sm:$0xff]  ;;  %s3649_s9 = smov [#allocation2]  }
0x1535   :  { %3327 = vmatmul.mubr.msk.f32.vlgmr.msra.gmra.mrb[18].mxu0 %vm200_vm2, %v2428_v31  ;;  %vm2720_vm9 = vcmp.ne.s32.totalorder %v3619_v63, 5  ;;  %v2722_v31 = vld [vmem:[%s4503_s6 + $0x8] sm:$0xff]  ;;  %vm2763_vm12 = vcmp.ne.s32.totalorder %v2723_v35, 4294967196  ;;  %s2803_s11 = sshll.u32 %s3649_s9, 4  ;;  %s2804_s11 = int_to_ptr.vmem [resolvable:$true] %s2803_s11 }
0x1536   :  { %3517 = vmatpush3.bf16.xpose.msk.msra.mxu0 %vm4337_vm7, %v3810_v6  ;;  %s3620_s7 = scalar_lea.vmem %s2804_s11, 16  ;;  %s3624_s22 = scalar_lea.vmem %s2804_s11, 32 }
0x1537   :  { %3520 = vmatprep.subr.msk.bf16.mxu0 %vm4337_vm7, %v3812_v7  ;;  %p3621_p0 = scmp.ne.s32.totalorder %s2804_s11, %s3620_s7  ;;  %p3625_p1 = scmp.lt.s32.totalorder %s2804_s11, %s2804_s11 }
0x1538   :  { %p3626_p2 = scmp.lt.s32.totalorder %s3624_s22, %s3620_s7 }
0x153a   :  { %p3627_p3 = por %p3626_p2, %p3625_p1 }
0x153c   :  { %p3628_p4 = pnand %p3627_p3, %p3621_p0 }
0x153e   :  { %3523 = vmatpush3.bf16.xpose.msk.msra.mxu0 %vm4337_vm7, %v3812_v7 }
0x153f   :  { %3526 = vmatprep.subr.msk.bf16.mxu0 %vm4337_vm7, %v3826_v11 }
0x1546   :  { %3529 = vmatpush3.bf16.xpose.msk.msra.mxu0 %vm4337_vm7, %v3826_v11 }
0x1547   :  { %3532 = vmatprep.subr.msk.bf16.mxu0 %vm4337_vm7, %v3836_v14 }
0x154e   :  { %3535 = vmatpush3.bf16.xpose.msk.msra.mxu0 %vm4337_vm7, %v3836_v14 }
0x154f   :  { %3538 = vmatprep.subr.msk.bf16.mxu0 %vm4337_vm7, %v3846_v17 }
0x1556   :  { %3541 = vmatpush3.bf16.xpose.msk.msra.mxu0 %vm4337_vm7, %v3846_v17 }
0x1557   :  { %3544 = vmatprep.subr.msk.bf16.mxu0 %vm4337_vm7, %v3856_v20 }
0x155e   :  { %3547 = vmatpush3.bf16.xpose.msk.msra.mxu0 %vm4337_vm7, %v3856_v20 }
0x155f   :  { %3550 = vmatprep.subr.msk.bf16.mxu0 %vm4337_vm7, %v3866_v23 }
0x1566   :  { %3553 = vmatpush3.bf16.xpose.msk.msra.mxu0 %vm4337_vm7, %v3866_v23 }
0x1567   :  { %3556 = vmatprep.subr.msk.bf16.mxu0 %vm4337_vm7, %v3876_v26 }
0x156e   :  { %3559 = vmatpush3.bf16.xpose.msk.msra.mxu0 %vm4337_vm7, %v3876_v26 }
0x1608   :  { %v3328_v1 = vpop.f32.mrb[18].mxu0 }
0x1609   :  { %v2518_v30 = vadd.f32 %v3328_v1, %v2879_v0  ;;  %v2512_v37 = vpop.f32.mrb[19].mxu0 }
0x160a   :  { %v2513_v38 = vadd.f32 %v2879_v0, %v2512_v37  ;;  %v2724_v0 = vsel %vm2720_vm9, 4294967196, %v2722_v31 }
0x160b   :  { %v2522_v4 = vmul.f32 %v2518_v30, %v2518_v30  ;;  %vm2764_vm13 = vcmp.ne.s32.totalorder %v2724_v0, 4294967196 }
0x160c   :  { %v2521_v9 = vmul.f32 %v2513_v38, %v2513_v38 }
0x160d   :  { %v2524_v27 = vmul.f32 %v2522_v4, %v2518_v30 }
0x160e   :  { %v2523_v12 = vmul.f32 %v2521_v9, %v2513_v38 }
0x160f   :  { %v2526_v59 = vmul.f32 0.044715, %v2524_v27 }
0x1610   :  { %v2525_v43 = vmul.f32 0.044715, %v2523_v12 }
0x1611   :  { %v2528_v13 = vadd.f32 %v2526_v59, %v2518_v30 }
0x1612   :  { %v2527_v15 = vadd.f32 %v2525_v43, %v2513_v38 }
0x1613   :  { %v2530_v19 = vmul.f32 0.7978846, %v2528_v13 }
0x1614   :  { %v2529_v21 = vmul.f32 0.7978846, %v2527_v15 }
0x1615   :  { %3600 = vtanh.f32 %v2530_v19 }
0x1616   :  { %3602 = vtanh.f32 %v2529_v21 }
0x161f   :  { %v3601_v25 = vpop.eup %3600 }
0x1620   :  { %v3603_v54 = vpop.eup %3602  ;;  %v2534_v32 = vadd.f32 1.0, %v3601_v25  ;;  %v2906_v25 = vsel %vm2764_vm13, 1.0, %v3648_v56 }
0x1621   :  { %v2533_v57 = vadd.f32 1.0, %v3603_v54  ;;  %v2905_v54 = vsel %vm2763_vm12, 1.0, %v3648_v56 }
0x1622   :  { %v2536_v34 = vmul.f32 0.5, %v2534_v32  ;;  %v2783_v32 = vsel %vm2773_vm14, %v2905_v54, 0.0 }
0x1623   :  { %v2535_v39 = vmul.f32 0.5, %v2533_v57 }
0x1624   :  { %v2538_v51 = vmul.f32 %v2536_v34, %v2518_v30 }
0x1625   :  { %v2537_v24 = vmul.f32 %v2535_v39, %v2513_v38 }
0x1626   :  { %v2544_v36 = vsel %vm200_vm2, %v2538_v51, 0.0 }
0x1627   :  { %2545 = vadd.xlane.f32.xlu0 %v2544_v36  ;;  %v2541_v5 = vsel %vm200_vm2, %v2537_v24, 0.0 }
0x1628   :  { %2542 = vadd.xlane.f32.xlu1 %v2541_v5 }
0x16b4   :  { %v2546_v6 = vpop.xlane.xlu0 %2545 }
0x16b5   :  { %v2548_v7 = vmul.f32 0.03125, %v2546_v6  ;;  %v2543_v11 = vpop.xlane.xlu1 %2542 }
0x16b6   :  { %v2547_v14 = vmul.f32 0.03125, %v2543_v11 }
0x16b7   :  { %v2550_v17 = vsub.f32 %v2538_v51, %v2548_v7 }
0x16b8   :  { %v2549_v20 = vsub.f32 %v2537_v24, %v2547_v14 }
0x16b9   :  { %v2552_v40 = vmul.f32 %v2550_v17, %v2550_v17 }
0x16ba   :  { %v2551_v41 = vmul.f32 %v2549_v20, %v2549_v20 }
0x16bb   :  { %v2556_v44 = vsel %vm200_vm2, %v2552_v40, 0.0 }
0x16bc   :  { %2557 = vadd.xlane.f32.xlu0 %v2556_v44  ;;  %v2553_v23 = vsel %vm200_vm2, %v2551_v41, 0.0 }
0x16bd   :  { %2554 = vadd.xlane.f32.xlu1 %v2553_v23 }
0x1749   :  { %v2558_v45 = vpop.xlane.xlu0 %2557 }
0x174a   :  { %v2560_v16 = vmul.f32 0.03125, %v2558_v45  ;;  %v2555_v42 = vpop.xlane.xlu1 %2554 }
0x174b   :  { %v2559_v2 = vmul.f32 0.03125, %v2555_v42 }
0x174c   :  { %v2562_v50 = vadd.f32 1e-07, %v2560_v16 }
0x174d   :  { %v2561_v26 = vadd.f32 1e-07, %v2559_v2 }
0x174e   :  { %3604 = vrsqrt.f32 %v2562_v50 }
0x174f   :  { %3606 = vrsqrt.f32 %v2561_v26 }
0x1758   :  { %v3605_v47 = vpop.eup %3604 }
0x1759   :  { %v3607_v58 = vpop.eup %3606  ;;  %v2566_v61 = vmul.f32 %v3605_v47, %v2550_v17 }
0x175a   :  { %v2565_v48 = vmul.f32 %v3607_v58, %v2549_v20 }
0x175b   :  { %v2574_v46 = vmul.f32 %v2882_v52, %v2566_v61 }
0x175c   :  { %v2573_v49 = vmul.f32 %v2882_v52, %v2565_v48 }
0x175d   :  { %v2582_v55 = vadd.f32 %v2883_v3, %v2574_v46 }
0x175e   :  { %v2581_v53 = vadd.f32 %v2883_v3, %v2573_v49 }
0x1760   :  { %3361 = vmatprep.mubr.msk.f32.mxu0 %vm200_vm2, %v2581_v53 }
0x1761   :  { %3362 = vmatmul.mubr.msk.f32.vlgmr.msra.gmra.mrb[20].mxu0 %vm200_vm2, %v2582_v55 }
0x1834   :  { %v3363_v18 = vpop.f32.mrb[20].mxu0 }
0x1835   :  { %v2716_v10 = vadd.f32 %v3363_v18, %v2884_v8  ;;  %v2710_v22 = vpop.f32.mrb[21].mxu0 }
0x1836   :  { %v2711_v29 = vadd.f32 %v2884_v8, %v2710_v22 }
0x1837   :  { %2727 = vmax.xlane.f32.xlu0 %v2716_v10 }
0x1838   :  { %2725 = vmax.xlane.f32.xlu1 %v2711_v29 }
0x1849   :  { %2746 = vperm.xlu1 %3567, %v2723_v35  }
0x184d   :  { %2749 = vperm.xlu0 %3566, %v2724_v0  }
0x18c4   :  { %v2728_v1 = vpop.xlane.xlu0 %2727 }
0x18c5   :  { %v2730_v30 = vsub.f32 %v2716_v10, %v2728_v1  ;;  %v2726_v37 = vpop.xlane.xlu1 %2725 }
0x18c6   :  { %v2729_v38 = vsub.f32 %v2711_v29, %v2726_v37 }
0x18c7   :  { %v2733_v4 = vmul.f32 1.442695, %v2730_v30 }
0x18c8   :  { %v2731_v9 = vmul.f32 1.442695, %v2729_v38 }
0x18c9   :  { %3608 = vpow2.f32 %v2733_v4  ;;  %v2747_v12 = vpop.permute.xlu1 %2746 }
0x18ca   :  { %3610 = vpow2.f32 %v2731_v9  ;;  %vm2751_vm11 = vcmp.eq.s32.totalorder %v3882_v28, %v2747_v12 }
0x18cb   :  { %v2903_v15 = vsel %vm2751_vm11, 1.0, %v3648_v56 }
0x18cc   :  { %v2750_v27 = vpop.permute.xlu0 %2749  ;;  %v2757_v21 = vmul.f32 %v2903_v15, %v2711_v29 }
0x18cd   :  { %vm2752_vm10 = vcmp.eq.s32.totalorder %v3882_v28, %v2750_v27  ;;  %v2784_v28 = vsel %vm2773_vm14, %v2906_v25, 0.0 }
0x18ce   :  { %v2904_v43 = vsel %vm2752_vm10, 1.0, %v3648_v56  ;;  %v2785_v57 = vadd.f32 %v2784_v28, %v2783_v32 }
0x18cf   :  { %v2758_v19 = vmul.f32 %v2904_v43, %v2716_v10 }
0x18d0   :  { %v2786_v34 = vrot.slane %v2785_v57, 4 }
0x18d2   :  { %v2787_v39 = vadd.f32 %v2786_v34, %v2785_v57 }
0x18d3   :  { %v3609_v59 = vpop.eup %3608 }
0x18d4   :  { %v3611_v13 = vpop.eup %3610  ;;  %2737 = vadd.xlane.f32.xlu0 %v3609_v59  ;;  %v2788_v36 = vrot.slane %v2787_v39, 2 }
0x18d5   :  { %2735 = vadd.xlane.f32.xlu1 %v3611_v13 }
0x18d6   :  { %v2789_v5 = vadd.f32 %v2788_v36, %v2787_v39 }
0x18d8   :  { %2761 = vadd.xlane.f32.xlu0 %v2758_v19  ;;  %v2790_v6 = vrot.slane %v2789_v5, 1 }
0x18d9   :  { %2759 = vadd.xlane.f32.xlu1 %v2757_v21 }
0x18da   :  { %v2791_v40 = vadd.f32 %v2790_v6, %v2789_v5 }
0x18dc   :  { %v2792_v42 = vmax.f32 %v2791_v40, 1.0 }
0x1961   :  { %v2738_v51 = vpop.xlane.xlu0 %2737 }
0x1962   :  { %3612 = vlog2.f32 %v2738_v51  ;;  %v2736_v24 = vpop.xlane.xlu1 %2735 }
0x1963   :  { %3614 = vlog2.f32 %v2736_v24 }
0x1964   :  { %3616 = vrcp.f32 %v2792_v42 }
0x1965   :  { %v2762_v56 = vpop.xlane.xlu0 %2761 }
0x1966   :  { %v2760_v44 = vpop.xlane.xlu1 %2759 }
0x196c   :  { %v3613_v33 = vpop.eup %3612 }
0x196d   :  { %v3615_v7 = vpop.eup %3614  ;;  %v2742_v11 = vmul.f32 0.6931472, %v3613_v33 }
0x196e   :  { %v2740_v14 = vmul.f32 0.6931472, %v3615_v7  ;;  %v3617_v3 = vpop.eup %3616 }
0x196f   :  { %v2744_v17 = vadd.f32 %v2742_v11, %v2728_v1 }
0x1970   :  { %v2743_v20 = vadd.f32 %v2740_v14, %v2726_v37 }
0x1971   :  { %v2770_v41 = vsub.f32 %v2744_v17, %v2762_v56 }
0x1972   :  { %v2769_v23 = vsub.f32 %v2743_v20, %v2760_v44 }
0x1973   :  { %v2772_v45 = vmul.f32 %v2906_v25, %v2770_v41 }
0x1974   :  { %v2771_v16 = vmul.f32 %v2905_v54, %v2769_v23 }
0x1975   :  { %v2775_v2 = vsel %vm2773_vm14, %v2772_v45, 0.0 }
0x1976   :  { %v2774_v50 = vsel %vm2773_vm14, %v2771_v16, 0.0 }
0x1977   :  { %v2776_v26 = vadd.f32 %v2775_v2, %v2774_v50 }
0x1979   :  { %v2777_v47 = vrot.slane %v2776_v26, 4 }
0x197b   :  { %v2778_v52 = vadd.f32 %v2777_v47, %v2776_v26 }
0x197d   :  { %v2779_v58 = vrot.slane %v2778_v52, 2 }
0x197f   :  { %v2780_v61 = vadd.f32 %v2779_v58, %v2778_v52 }
0x1981   :  { %v2781_v48 = vrot.slane %v2780_v61, 1 }
0x1983   :  { %v2782_v46 = vadd.f32 %v2781_v48, %v2780_v61 }
0x1985   :  { %v2794_v49 = vmul.f32 %v3617_v3, %v2782_v46 }
0x1987   :  { %2796 = vst.msk [vmem:[#allocation2] sm:$0x1] %vm2795_vm15, %v2794_v49 }
0x1988   :  { %3631 = shalt.err (!%p3628_p4)
}
0x1989   :  { %s3632_s0 = scalar_lea.hbm %s4464_s28, 16 }
0x198a   :  { %p3633_p5 = scmp.ne.s32.totalorder %s4464_s28, %s3632_s0  ;;  %p3636_p6 = scmp.lt.u32.totalorder %s3632_s0, %s4464_s28 }
0x198c   :  { %p3638_p7 = pnand %p3636_p6, %p3633_p5 }
0x198e   :  { %3641 = shalt.err (!%p3638_p7)
}
0x198f   :  { %2806 = dma.vmem_to_hbm [thread:$0]  %s2804_s11, 16, %s4464_s28, [#allocation3]  }
0x1990   :  { %3642 = dma.done.wait [#allocation3], 16  }
0x1991   :  { %3643 = vsyncadd [#allocation3], 4294967280 }
0x1992   :  { %2810 = vsyncpa [#allocation3], 1 }

</bundles_post_ra>
